<compile_context>
chip_gen: v6e
topology: v6e:2x2x1
jax: 0.10.0
libtpu: 0.0.40
codegen_flags: <defaults>
</compile_context>

<pallas_src>
import functools

import jax
import jax.numpy as jnp
from jax.experimental import pallas as pl
from jax.experimental.pallas import tpu as pltpu


def _retinex_loss_kernel(inp_ref, refl_ref, illum_ref, out_ref,
                         acc_recon, acc_illum, acc_refl, *,
                         alpha: float, beta: float, gamma: float,
                         inv_recon: float, inv_gx: float, inv_gy: float,
                         H: int, W: int):
    i = pl.program_id(0)

    @pl.when(i == 0)
    def _init():
        acc_recon[...] = jnp.zeros_like(acc_recon)
        acc_illum[...] = jnp.zeros_like(acc_illum)
        acc_refl[...] = jnp.zeros_like(acc_refl)

    inp = inp_ref[...]        # (B_TILE, H, W) f32
    refl = refl_ref[...]
    illum = illum_ref[...]
    blk_shape = inp.shape

    # Validity masks for the gradient positions, pre-scaled by the constant
    # reciprocals of the element counts (no in-loop divides, wrap-around
    # column/row of the roll is zeroed out).
    w_idx = jax.lax.broadcasted_iota(jnp.int32, blk_shape, 2)
    h_idx = jax.lax.broadcasted_iota(jnp.int32, blk_shape, 1)
    scale_x = jnp.where(w_idx < (W - 1), jnp.float32(inv_gx), jnp.float32(0.0))
    scale_y = jnp.where(h_idx < (H - 1), jnp.float32(inv_gy), jnp.float32(0.0))

    # --- reconstruction L1: accumulate raw |R*I - input| (scaled at the end) ---
    recon_err = jnp.abs(refl * illum - inp)
    acc_recon[...] += jnp.sum(recon_err, axis=0)

    # --- smoothness terms: roll + mask instead of off-by-one slices ---
    def smooth_partial(x):
        # rolled[..., w] = x[..., (w+1) % W]  /  rolled[..., h, :] = x[..., (h+1) % H, :]
        gx = jnp.abs(x - pltpu.roll(x, W - 1, axis=2))
        gy = jnp.abs(x - pltpu.roll(x, H - 1, axis=1))
        return jnp.sum(gx * scale_x + gy * scale_y, axis=0)

    acc_illum[...] += smooth_partial(illum)
    acc_refl[...] += smooth_partial(refl)

    # --- finalize: full reductions, scaling and weighting once ---
    @pl.when(i == pl.num_programs(0) - 1)
    def _finalize():
        loss_recon = jnp.sum(acc_recon[...]) * jnp.float32(inv_recon)
        loss_illum = jnp.sum(acc_illum[...])      # already scaled via masks
        loss_refl = jnp.sum(acc_refl[...])
        out_ref[0] = (jnp.float32(alpha) * loss_recon
                      + jnp.float32(beta) * loss_illum
                      + jnp.float32(gamma) * loss_refl)
        out_ref[1] = loss_recon
        out_ref[2] = loss_illum
        out_ref[3] = loss_refl


def retinex_loss(input_image, reflect, illum,
                 alpha: float = 1.0, beta: float = 0.1, gamma: float = 0.1,
                 block_batch: int | None = None):
    """Matches RetinexLoss.forward(input_image, reflect, illum) (NCHW)."""
    N, C, H, W = input_image.shape
    NC = N * C

    inp = jnp.asarray(input_image, jnp.float32).reshape(NC, H, W)
    rfl = jnp.asarray(reflect, jnp.float32).reshape(NC, H, W)
    ill = jnp.asarray(illum, jnp.float32).reshape(NC, H, W)

    # Tile the batch axis: aim for ~2 MiB per input per grid step.
    img_bytes = H * W * 4
    if block_batch is None:
        target_bytes = 2 * 1024 * 1024
        block_batch = max(1, min(NC, target_bytes // max(img_bytes, 1)))
    block_batch = int(max(1, min(NC, block_batch)))

    # Zero-pad the batch axis so the grid tiles it exactly; zero images add
    # nothing to any sum and the divisors below use the true sizes.
    num_blocks = pl.cdiv(NC, block_batch)
    NC_pad = num_blocks * block_batch
    if NC_pad != NC:
        pad = ((0, NC_pad - NC), (0, 0), (0, 0))
        inp = jnp.pad(inp, pad)
        rfl = jnp.pad(rfl, pad)
        ill = jnp.pad(ill, pad)

    inv_recon = 1.0 / float(NC * H * W)
    inv_gx = 1.0 / float(NC * H * (W - 1))
    inv_gy = 1.0 / float(NC * (H - 1) * W)

    kernel = functools.partial(
        _retinex_loss_kernel,
        alpha=float(alpha), beta=float(beta), gamma=float(gamma),
        inv_recon=inv_recon, inv_gx=inv_gx, inv_gy=inv_gy, H=H, W=W)

    blk_spec = pl.BlockSpec((block_batch, H, W), lambda i: (i, 0, 0))

    out = pl.pallas_call(
        kernel,
        grid=(num_blocks,),
        in_specs=[blk_spec, blk_spec, blk_spec],
        out_specs=pl.BlockSpec(memory_space=pltpu.MemorySpace.SMEM),
        out_shape=jax.ShapeDtypeStruct((4,), jnp.float32),
        scratch_shapes=[
            pltpu.VMEM((H, W), jnp.float32),   # recon accumulator
            pltpu.VMEM((H, W), jnp.float32),   # illum smoothness accumulator
            pltpu.VMEM((H, W), jnp.float32),   # reflect smoothness accumulator
        ],
        compiler_params=pltpu.CompilerParams(
            dimension_semantics=("arbitrary",),
            vmem_limit_bytes=32 * 1024 * 1024),
    )(inp, rfl, ill)

    loss = out[0]
    aux = {
        "recon": out[1],
        "illumination_loss": out[2],
        "detail_loss": out[3],
        "reflectance": reflect,
        "illumination": illum,
    }
    return loss, aux


def _retinex_loss_ref(input_image, reflect, illum,
                      alpha=1.0, beta=0.1, gamma=0.1):
    """Pure-JAX reference for correctness checking."""
    def grads(x):
        gx = x[:, :, :, :-1] - x[:, :, :, 1:]
        gy = x[:, :, :-1, :] - x[:, :, 1:, :]
        return gx, gy

    loss_recon = jnp.mean(jnp.abs(reflect * illum - input_image))
    gx, gy = grads(illum)
    loss_illum = jnp.mean(jnp.abs(gx)) + jnp.mean(jnp.abs(gy))
    gx, gy = grads(reflect)
    loss_refl = jnp.mean(jnp.abs(gx)) + jnp.mean(jnp.abs(gy))
    total = alpha * loss_recon + beta * loss_illum + gamma * loss_refl
    return total, loss_recon, loss_illum, loss_refl


if __name__ == "__main__":
    key = jax.random.PRNGKey(0)
    k1, k2, k3 = jax.random.split(key, 3)
    N, C, H, W = 2, 4, 16, 16

    input_image = jax.random.uniform(k1, (N, C, H, W), dtype=jnp.float32)
    reflect = jax.random.uniform(k2, (N, C, H, W), dtype=jnp.float32)
    illum = jax.random.uniform(k3, (N, C, H, W), dtype=jnp.float32)

    ref_loss, ref_recon, ref_illum, ref_refl = _retinex_loss_ref(
        input_image, reflect, illum)

    # Exercise: default tiling (grid=1), multi-step grid, and padded grid.
    for bb in (None, 2, 3):
        loss, aux = retinex_loss(input_image, reflect, illum, block_batch=bb)
        loss = jax.block_until_ready(loss)
        assert jnp.allclose(loss, ref_loss, atol=1e-5, rtol=1e-5), (bb, loss, ref_loss)
        assert jnp.allclose(aux["recon"], ref_recon, atol=1e-5, rtol=1e-5), bb
        assert jnp.allclose(aux["illumination_loss"], ref_illum, atol=1e-5, rtol=1e-5), bb
        assert jnp.allclose(aux["detail_loss"], ref_refl, atol=1e-5, rtol=1e-5), bb

    print("KERNEL_OK")
</pallas_src>

<mosaic_0001>
module attributes {stable_mosaic.version = 11 : i64} {
  func.func @_retinex_loss_kernel(%arg0: i32, %arg1: memref<8x16x16xf32, #tpu.memory_space<vmem>>, %arg2: memref<8x16x16xf32, #tpu.memory_space<vmem>>, %arg3: memref<8x16x16xf32, #tpu.memory_space<vmem>>, %arg4: memref<4xf32, #tpu.memory_space<smem>>, %arg5: memref<16x16xf32, #tpu.memory_space<vmem>>, %arg6: memref<16x16xf32, #tpu.memory_space<vmem>>, %arg7: memref<16x16xf32, #tpu.memory_space<vmem>>) attributes {dimension_semantics = [#tpu.dimension_semantics<arbitrary>], iteration_bounds = array<i64: 1>, scalar_prefetch = 0 : i64, scratch_operands = 3 : i64, tpu.core_type = #tpu.core_type<tc>, window_params = [{transform_indices = @transform_0, window_bounds = array<i64: 8, 16, 16>}, {transform_indices = @transform_1, window_bounds = array<i64: 8, 16, 16>}, {transform_indices = @transform_2, window_bounds = array<i64: 8, 16, 16>}, {transform_indices = @transform_3, window_bounds = array<i64: 4>}]} {
    %c0_i32 = arith.constant 0 : i32
    %0 = arith.cmpi eq, %arg0, %c0_i32 : i32
    %1 = arith.extui %0 : i1 to i32
    %c0_i32_0 = arith.constant 0 : i32
    %2 = arith.cmpi ne, %1, %c0_i32_0 : i32
    scf.if %2 {
      %cst_34 = arith.constant 0.000000e+00 : f32
      %54 = vector.broadcast %cst_34 : f32 to vector<16x16xf32>
      %c0_35 = arith.constant 0 : index
      %c0_36 = arith.constant 0 : index
      %55 = vector.load %arg5[%c0_35, %c0_36] : memref<16x16xf32, #tpu.memory_space<vmem>>, vector<16x16xf32>
      tpu.vector_store %arg5[%c0_35, %c0_36], %54 {strides = array<i32>} : memref<16x16xf32, #tpu.memory_space<vmem>>, vector<16x16xf32>,
      %cst_37 = arith.constant 0.000000e+00 : f32
      %56 = vector.broadcast %cst_37 : f32 to vector<16x16xf32>
      %c0_38 = arith.constant 0 : index
      %c0_39 = arith.constant 0 : index
      %57 = vector.load %arg6[%c0_38, %c0_39] : memref<16x16xf32, #tpu.memory_space<vmem>>, vector<16x16xf32>
      tpu.vector_store %arg6[%c0_38, %c0_39], %56 {strides = array<i32>} : memref<16x16xf32, #tpu.memory_space<vmem>>, vector<16x16xf32>,
      %cst_40 = arith.constant 0.000000e+00 : f32
      %58 = vector.broadcast %cst_40 : f32 to vector<16x16xf32>
      %c0_41 = arith.constant 0 : index
      %c0_42 = arith.constant 0 : index
      %59 = vector.load %arg7[%c0_41, %c0_42] : memref<16x16xf32, #tpu.memory_space<vmem>>, vector<16x16xf32>
      tpu.vector_store %arg7[%c0_41, %c0_42], %58 {strides = array<i32>} : memref<16x16xf32, #tpu.memory_space<vmem>>, vector<16x16xf32>,
    } else {
    }
    %c0 = arith.constant 0 : index
    %c0_1 = arith.constant 0 : index
    %c0_2 = arith.constant 0 : index
    %3 = vector.load %arg1[%c0, %c0_1, %c0_2] : memref<8x16x16xf32, #tpu.memory_space<vmem>>, vector<8x16x16xf32>
    %c0_3 = arith.constant 0 : index
    %c0_4 = arith.constant 0 : index
    %c0_5 = arith.constant 0 : index
    %4 = vector.load %arg2[%c0_3, %c0_4, %c0_5] : memref<8x16x16xf32, #tpu.memory_space<vmem>>, vector<8x16x16xf32>
    %c0_6 = arith.constant 0 : index
    %c0_7 = arith.constant 0 : index
    %c0_8 = arith.constant 0 : index
    %5 = vector.load %arg3[%c0_6, %c0_7, %c0_8] : memref<8x16x16xf32, #tpu.memory_space<vmem>>, vector<8x16x16xf32>
    %6 = tpu.iota {dimensions = array<i32: 2>} : vector<8x16x16xi32>
    %7 = tpu.iota {dimensions = array<i32: 1>} : vector<8x16x16xi32>
    %c15_i32 = arith.constant 15 : i32
    %8 = vector.broadcast %c15_i32 : i32 to vector<8x16x16xi32>
    %9 = arith.cmpi slt, %6, %8 : vector<8x16x16xi32>
    %cst = arith.constant 5.2083336E-4 : f32
    %cst_9 = arith.constant 0.000000e+00 : f32
    %10 = vector.broadcast %cst : f32 to vector<8x16x16xf32>
    %11 = vector.broadcast %cst_9 : f32 to vector<8x16x16xf32>
    %12 = arith.select %9, %10, %11 : vector<8x16x16xi1>, vector<8x16x16xf32>
    %c15_i32_10 = arith.constant 15 : i32
    %13 = vector.broadcast %c15_i32_10 : i32 to vector<8x16x16xi32>
    %14 = arith.cmpi slt, %7, %13 : vector<8x16x16xi32>
    %cst_11 = arith.constant 5.2083336E-4 : f32
    %cst_12 = arith.constant 0.000000e+00 : f32
    %15 = vector.broadcast %cst_11 : f32 to vector<8x16x16xf32>
    %16 = vector.broadcast %cst_12 : f32 to vector<8x16x16xf32>
    %17 = arith.select %14, %15, %16 : vector<8x16x16xi1>, vector<8x16x16xf32>
    %18 = arith.mulf %4, %5 : vector<8x16x16xf32>
    %19 = arith.subf %18, %3 : vector<8x16x16xf32>
    %20 = math.absf %19 : vector<8x16x16xf32>
    %c0_13 = arith.constant 0 : index
    %c0_14 = arith.constant 0 : index
    %21 = vector.load %arg5[%c0_13, %c0_14] : memref<16x16xf32, #tpu.memory_space<vmem>>, vector<16x16xf32>
    %cst_15 = arith.constant dense<0.000000e+00> : vector<16x16xf32>
    %22 = vector.multi_reduction <add>, %20, %cst_15 [0] : vector<8x16x16xf32> to vector<16x16xf32>
    %23 = arith.addf %21, %22 : vector<16x16xf32>
    %c0_16 = arith.constant 0 : index
    %c0_17 = arith.constant 0 : index
    %24 = vector.load %arg5[%c0_16, %c0_17] : memref<16x16xf32, #tpu.memory_space<vmem>>, vector<16x16xf32>
    tpu.vector_store %arg5[%c0_16, %c0_17], %23 {strides = array<i32>} : memref<16x16xf32, #tpu.memory_space<vmem>>, vector<16x16xf32>,
    %c0_18 = arith.constant 0 : index
    %c0_19 = arith.constant 0 : index
    %25 = vector.load %arg6[%c0_18, %c0_19] : memref<16x16xf32, #tpu.memory_space<vmem>>, vector<16x16xf32>
    %c15_i32_20 = arith.constant 15 : i32
    %26 = tpu.dynamic_rotate %5 by %c15_i32_20 dim 2 : vector<8x16x16xf32>, i32 -> vector<8x16x16xf32>
    %27 = arith.subf %5, %26 : vector<8x16x16xf32>
    %28 = math.absf %27 : vector<8x16x16xf32>
    %c15_i32_21 = arith.constant 15 : i32
    %29 = tpu.dynamic_rotate %5 by %c15_i32_21 dim 1 : vector<8x16x16xf32>, i32 -> vector<8x16x16xf32>
    %30 = arith.subf %5, %29 : vector<8x16x16xf32>
    %31 = math.absf %30 : vector<8x16x16xf32>
    %32 = arith.mulf %28, %12 : vector<8x16x16xf32>
    %33 = arith.mulf %31, %17 : vector<8x16x16xf32>
    %34 = arith.addf %32, %33 : vector<8x16x16xf32>
    %cst_22 = arith.constant dense<0.000000e+00> : vector<16x16xf32>
    %35 = vector.multi_reduction <add>, %34, %cst_22 [0] : vector<8x16x16xf32> to vector<16x16xf32>
    %36 = arith.addf %25, %35 : vector<16x16xf32>
    %c0_23 = arith.constant 0 : index
    %c0_24 = arith.constant 0 : index
    %37 = vector.load %arg6[%c0_23, %c0_24] : memref<16x16xf32, #tpu.memory_space<vmem>>, vector<16x16xf32>
    tpu.vector_store %arg6[%c0_23, %c0_24], %36 {strides = array<i32>} : memref<16x16xf32, #tpu.memory_space<vmem>>, vector<16x16xf32>,
    %c0_25 = arith.constant 0 : index
    %c0_26 = arith.constant 0 : index
    %38 = vector.load %arg7[%c0_25, %c0_26] : memref<16x16xf32, #tpu.memory_space<vmem>>, vector<16x16xf32>
    %c15_i32_27 = arith.constant 15 : i32
    %39 = tpu.dynamic_rotate %4 by %c15_i32_27 dim 2 : vector<8x16x16xf32>, i32 -> vector<8x16x16xf32>
    %40 = arith.subf %4, %39 : vector<8x16x16xf32>
    %41 = math.absf %40 : vector<8x16x16xf32>
    %c15_i32_28 = arith.constant 15 : i32
    %42 = tpu.dynamic_rotate %4 by %c15_i32_28 dim 1 : vector<8x16x16xf32>, i32 -> vector<8x16x16xf32>
    %43 = arith.subf %4, %42 : vector<8x16x16xf32>
    %44 = math.absf %43 : vector<8x16x16xf32>
    %45 = arith.mulf %41, %12 : vector<8x16x16xf32>
    %46 = arith.mulf %44, %17 : vector<8x16x16xf32>
    %47 = arith.addf %45, %46 : vector<8x16x16xf32>
    %cst_29 = arith.constant dense<0.000000e+00> : vector<16x16xf32>
    %48 = vector.multi_reduction <add>, %47, %cst_29 [0] : vector<8x16x16xf32> to vector<16x16xf32>
    %49 = arith.addf %38, %48 : vector<16x16xf32>
    %c0_30 = arith.constant 0 : index
    %c0_31 = arith.constant 0 : index
    %50 = vector.load %arg7[%c0_30, %c0_31] : memref<16x16xf32, #tpu.memory_space<vmem>>, vector<16x16xf32>
    tpu.vector_store %arg7[%c0_30, %c0_31], %49 {strides = array<i32>} : memref<16x16xf32, #tpu.memory_space<vmem>>, vector<16x16xf32>,
    %c0_i32_32 = arith.constant 0 : i32
    %51 = arith.cmpi eq, %arg0, %c0_i32_32 : i32
    %52 = arith.extui %51 : i1 to i32
    %c0_i32_33 = arith.constant 0 : i32
    %53 = arith.cmpi ne, %52, %c0_i32_33 : i32
    scf.if %53 {
      %c0_34 = arith.constant 0 : index
      %c0_35 = arith.constant 0 : index
      %54 = vector.load %arg5[%c0_34, %c0_35] : memref<16x16xf32, #tpu.memory_space<vmem>>, vector<16x16xf32>
      %55 = vector.shape_cast %54 : vector<16x16xf32> to vector<1x16x16xf32>
      %cst_36 = arith.constant dense<0.000000e+00> : vector<1xf32>
      %56 = vector.multi_reduction <add>, %55, %cst_36 [1, 2] : vector<1x16x16xf32> to vector<1xf32>
      %57 = vector.shape_cast %56 : vector<1xf32> to vector<1x1x1xf32>
      %58 = vector.extract %57[0, 0, 0] : f32 from vector<1x1x1xf32>
      %cst_37 = arith.constant 4.8828125E-4 : f32
      %59 = arith.mulf %58, %cst_37 : f32
      %c0_38 = arith.constant 0 : index
      %c0_39 = arith.constant 0 : index
      %60 = vector.load %arg6[%c0_38, %c0_39] : memref<16x16xf32, #tpu.memory_space<vmem>>, vector<16x16xf32>
      %61 = vector.shape_cast %60 : vector<16x16xf32> to vector<1x16x16xf32>
      %cst_40 = arith.constant dense<0.000000e+00> : vector<1xf32>
      %62 = vector.multi_reduction <add>, %61, %cst_40 [1, 2] : vector<1x16x16xf32> to vector<1xf32>
      %63 = vector.shape_cast %62 : vector<1xf32> to vector<1x1x1xf32>
      %64 = vector.extract %63[0, 0, 0] : f32 from vector<1x1x1xf32>
      %c0_41 = arith.constant 0 : index
      %c0_42 = arith.constant 0 : index
      %65 = vector.load %arg7[%c0_41, %c0_42] : memref<16x16xf32, #tpu.memory_space<vmem>>, vector<16x16xf32>
      %66 = vector.shape_cast %65 : vector<16x16xf32> to vector<1x16x16xf32>
      %cst_43 = arith.constant dense<0.000000e+00> : vector<1xf32>
      %67 = vector.multi_reduction <add>, %66, %cst_43 [1, 2] : vector<1x16x16xf32> to vector<1xf32>
      %68 = vector.shape_cast %67 : vector<1xf32> to vector<1x1x1xf32>
      %69 = vector.extract %68[0, 0, 0] : f32 from vector<1x1x1xf32>
      %cst_44 = arith.constant 1.000000e+00 : f32
      %70 = arith.mulf %cst_44, %59 : f32
      %cst_45 = arith.constant 1.000000e-01 : f32
      %71 = arith.mulf %cst_45, %64 : f32
      %72 = arith.addf %70, %71 : f32
      %cst_46 = arith.constant 1.000000e-01 : f32
      %73 = arith.mulf %cst_46, %69 : f32
      %74 = arith.addf %72, %73 : f32
      %c0_47 = arith.constant 0 : index
      %75 = memref.load %arg4[%c0_47] : memref<4xf32, #tpu.memory_space<smem>>
      memref.store %74, %arg4[%c0_47] : memref<4xf32, #tpu.memory_space<smem>>
      %c1 = arith.constant 1 : index
      %76 = memref.load %arg4[%c1] : memref<4xf32, #tpu.memory_space<smem>>
      memref.store %59, %arg4[%c1] : memref<4xf32, #tpu.memory_space<smem>>
      %c2 = arith.constant 2 : index
      %77 = memref.load %arg4[%c2] : memref<4xf32, #tpu.memory_space<smem>>
      memref.store %64, %arg4[%c2] : memref<4xf32, #tpu.memory_space<smem>>
      %c3 = arith.constant 3 : index
      %78 = memref.load %arg4[%c3] : memref<4xf32, #tpu.memory_space<smem>>
      memref.store %69, %arg4[%c3] : memref<4xf32, #tpu.memory_space<smem>>
    } else {
    }
    return
  }
  func.func @transform_0(%arg0: i32) -> (i32, i32, i32) {
    %c0_i32 = arith.constant 0 : i32
    %c0_i32_0 = arith.constant 0 : i32
    %c0_i32_1 = arith.constant 0 : i32
    return %arg0, %c0_i32, %c0_i32_0 : i32, i32, i32
  }
  func.func @transform_1(%arg0: i32) -> (i32, i32, i32) {
    %c0_i32 = arith.constant 0 : i32
    %c0_i32_0 = arith.constant 0 : i32
    %c0_i32_1 = arith.constant 0 : i32
    return %arg0, %c0_i32, %c0_i32_0 : i32, i32, i32
  }
  func.func @transform_2(%arg0: i32) -> (i32, i32, i32) {
    %c0_i32 = arith.constant 0 : i32
    %c0_i32_0 = arith.constant 0 : i32
    %c0_i32_1 = arith.constant 0 : i32
    return %arg0, %c0_i32, %c0_i32_0 : i32, i32, i32
  }
  func.func @transform_3(%arg0: i32) -> i32 {
    %c0_i32 = arith.constant 0 : i32
    %c0_i32_0 = arith.constant 0 : i32
    return %c0_i32 : i32
  }
}

</mosaic_0001>

<bundles_post_ra>
// kernel: tpu_custom_call.1
= control target key start
LH: loop header
LB: loop body
LE: loop exit
PB: predicated region body
PF: predicated region fallthrough
CT: control target
= control target key end

     0   :  { %8 = vsyncpa [#allocation6], 0  ;;  %s1864_s0 = inlined_call_operand.hbm [shape: f32[8,16,16], index: 0, kind: input, shape index: {}]   ;;  %s1865_s1 = inlined_call_operand.hbm [shape: f32[8,16,16], index: 1, kind: input, shape index: {}]   ;;  %s1866_s2 = inlined_call_operand.hbm [shape: f32[8,16,16], index: 2, kind: input, shape index: {}]   ;;  %s1867_s3 = inlined_call_operand.hbm [shape: f32[4], index: 3, kind: output, shape index: {}]  }
   0x1   :  { %9 = vsyncpa [#allocation9], 0 }
   0x2   :  { %10 = vsyncpa [#allocation7], 0  ;;  %s1084_s12 = smov [#allocation8]   ;;  %s1085_s14 = smov [#allocation5]  }
   0x3   :  { %s28_s13 = sshll.u32 %s1084_s12, 4  ;;  %s16_s15 = sshll.u32 %s1085_s14, 4  ;;  %s29_s13 = int_to_ptr.vmem [resolvable:$true] %s28_s13  ;;  %s17_s15 = int_to_ptr.vmem [resolvable:$true] %s16_s15 }
   0x4   :  { %s1018_s16 = scalar_lea.vmem %s29_s13, 2048  ;;  %p1023_p1 = scmp.lt.s32.totalorder %s29_s13, %s29_s13 }
   0x5   :  { %p1019_p0 = scmp.ne.s32.totalorder %s29_s13, %s1018_s16  ;;  %p1024_p2 = scmp.lt.s32.totalorder %s1018_s16, %s1018_s16 }
   0x7   :  { %p1025_p3 = por %p1024_p2, %p1023_p1 }
   0x9   :  { %p1026_p4 = pnand %p1025_p3, %p1019_p0 }
   0xb   :  { %1029 = shalt.err (!%p1026_p4)
}
   0xc   :  { %s1086_s17 = smov 128   ;;  %s1087_s18 = smov 8  }
   0xd   :  { %34 = dma.hbm_to_vmem [thread:$0]  %s1865_s1, 2048, %s29_s13, [#allocation9], %s1086_s17, %s1086_s17, %s1087_s18  }
   0xe   :  { %s1038_s21 = scalar_lea.vmem %s17_s15, 2048  ;;  %p1043_p6 = scmp.lt.s32.totalorder %s17_s15, %s17_s15 }
   0xf   :  { %p1039_p5 = scmp.ne.s32.totalorder %s17_s15, %s1038_s21  ;;  %p1044_p7 = scmp.lt.s32.totalorder %s1038_s21, %s1038_s21 }
  0x11   :  { %p1045_p8 = por %p1044_p7, %p1043_p6 }
  0x13   :  { %p1046_p9 = pnand %p1045_p8, %p1039_p5 }
  0x15   :  { %1049 = shalt.err (!%p1046_p9)
}
  0x16   :  { %22 = dma.hbm_to_vmem [thread:$0]  %s1864_s0, 2048, %s17_s15, [#allocation6], %s1086_s17, %s1086_s17, %s1087_s18  }
  0x17   :  { %s1088_s24 = smov [#allocation10]  }
  0x18   :  { %s40_s25 = sshll.u32 %s1088_s24, 4  ;;  %s41_s25 = int_to_ptr.vmem [resolvable:$true] %s40_s25 }
  0x19   :  { %s1058_s26 = scalar_lea.vmem %s41_s25, 2048  ;;  %p1063_p11 = scmp.lt.s32.totalorder %s41_s25, %s41_s25 }
  0x1a   :  { %p1059_p10 = scmp.ne.s32.totalorder %s41_s25, %s1058_s26  ;;  %p1064_p12 = scmp.lt.s32.totalorder %s1058_s26, %s1058_s26 }
  0x1c   :  { %p1065_p13 = por %p1064_p12, %p1063_p11 }
  0x1e   :  { %p1066_p0 = pnand %p1065_p13, %p1059_p10 }
  0x20   :  { %1069 = shalt.err (!%p1066_p0)
}
  0x21   :  { %46 = dma.hbm_to_vmem [thread:$0]  %s1866_s2, 2048, %s41_s25, [#allocation9], %s1086_s17, %s1086_s17, %s1087_s18  }
  0x22   :  { %1078 = dma.done.wait [#allocation6], 2048  }
  0x23   :  { %1079 = vsyncadd [#allocation6], 4294965248 }
  0x24   :  { %1080 = dma.done.wait [#allocation9], 4096  }
  0x25   :  { %1081 = vsyncadd [#allocation9], 4294963200  ;;  %vm60_vm0 = vcmask 130048   ;;  %v1089_v0 = vmov 0.0   ;;  %v1134_v1 = vld [vmem:[#allocation10] sm:$0xff]  ;;  %v1136_v2 = vld [vmem:[#allocation10 + $0x10] sm:$0xff] }
  0x26   :  { %61 = vst.msk [vmem:[#allocation2] sm:$0xff] %vm60_vm0, %v1089_v0  ;;  %62 = vst.msk [vmem:[#allocation2 + $0x8] sm:$0xff] %vm60_vm0, %v1089_v0  ;;  %s1090_s0 = smov 16   ;;  %v1142_v3 = vld [vmem:[#allocation10 + $0x8] sm:$0xff]  ;;  %v1144_v4 = vld [vmem:[#allocation10 + $0x18] sm:$0xff]  ;;  %vm213_vm1 = vcmask 1047680  }
  0x27   :  { %63 = vst.msk [vmem:[#allocation3] sm:$0xff] %vm60_vm0, %v1089_v0  ;;  %64 = vst.msk [vmem:[#allocation3 + $0x8] sm:$0xff] %vm60_vm0, %v1089_v0  ;;  %214 = vrot.lane.b32.xlu0 %v1134_v1, %s1090_s0  ;;  %220 = vrot.lane.b32.xlu1 %v1136_v2, %s1090_s0  ;;  %v1146_v5 = vld [vmem:[#allocation8] sm:$0xff]  ;;  %v1148_v7 = vld [vmem:[#allocation8 + $0x8] sm:$0xff]  ;;  %s1091_s2 = smov 127   ;;  %s1092_s9 = smov [#allocation11]  }
  0x28   :  { %65 = vst.msk [vmem:[#allocation4] sm:$0xff] %vm60_vm0, %v1089_v0  ;;  %66 = vst.msk [vmem:[#allocation4 + $0x8] sm:$0xff] %vm60_vm0, %v1089_v0  ;;  %v67_v6 = vld [vmem:[#allocation5] sm:$0xff]  ;;  %v126_v8 = vmul.f32 %v1134_v1, %v1146_v5  ;;  %v68_v9 = vld [vmem:[#allocation5 + $0x8] sm:$0xff]  ;;  %v127_v10 = vmul.f32 %v1142_v3, %v1148_v7 }
  0x29   :  { %v1154_v11 = vld [vmem:[#allocation8 + $0x10] sm:$0xff]  ;;  %v1158_v14 = vld [vmem:[#allocation8 + $0x18] sm:$0xff]  ;;  %v1164_v16 = vld [vmem:[#allocation10 + $0x20] sm:$0xff] }
  0x2a   :  { %v69_v12 = vld [vmem:[#allocation5 + $0x10] sm:$0xff]  ;;  %v128_v13 = vmul.f32 %v1136_v2, %v1154_v11  ;;  %v70_v15 = vld [vmem:[#allocation5 + $0x18] sm:$0xff]  ;;  %v142_v17 = vsub.f32 %v126_v8, %v67_v6  ;;  %v143_v18 = vsub.f32 %v127_v10, %v68_v9  ;;  %v129_v19 = vmul.f32 %v1144_v4, %v1158_v14  ;;  %v1168_v20 = vld [vmem:[#allocation8 + $0x20] sm:$0xff] }
  0x2b   :  { %217 = vrot.lane.b32.xlu0 %v1142_v3, %s1090_s0  ;;  %223 = vrot.lane.b32.xlu1 %v1144_v4, %s1090_s0  ;;  %v71_v21 = vld [vmem:[#allocation5 + $0x20] sm:$0xff]  ;;  %v1170_v22 = vld [vmem:[#allocation10 + $0x28] sm:$0xff]  ;;  %v130_v24 = vmul.f32 %v1164_v16, %v1168_v20  ;;  %v1176_v30 = vld [vmem:[#allocation10 + $0x30] sm:$0xff] }
  0x2c   :  { %v144_v23 = vsub.f32 %v128_v13, %v69_v12  ;;  %v1174_v25 = vld [vmem:[#allocation8 + $0x28] sm:$0xff]  ;;  %v158_v27 = vand.u32 2147483647, %v142_v17  ;;  %v159_v28 = vand.u32 2147483647, %v143_v18  ;;  %v145_v29 = vsub.f32 %v129_v19, %v70_v15  ;;  %v1180_v32 = vld [vmem:[#allocation8 + $0x30] sm:$0xff] }
  0x2d   :  { %v72_v26 = vld [vmem:[#allocation5 + $0x28] sm:$0xff]  ;;  %v131_v31 = vmul.f32 %v1170_v22, %v1174_v25  ;;  %v1182_v34 = vld [vmem:[#allocation10 + $0x38] sm:$0xff]  ;;  %v146_v35 = vsub.f32 %v130_v24, %v71_v21  ;;  %v132_v36 = vmul.f32 %v1176_v30, %v1180_v32  ;;  %v73_v37 = vld [vmem:[#allocation5 + $0x30] sm:$0xff] }
  0x2e   :  { %v160_v33 = vand.u32 2147483647, %v144_v23  ;;  %v177_v38 = vsel %vm60_vm0, %v158_v27, 0.0  ;;  %v192_v39 = vsel %vm60_vm0, %v159_v28, 0.0  ;;  %v161_v40 = vand.u32 2147483647, %v145_v29 }
  0x2f   :  { %226 = vrot.lane.b32.xlu0 %v1164_v16, %s1090_s0  ;;  %229 = vrot.lane.b32.xlu1 %v1170_v22, %s1090_s0  ;;  %v147_v41 = vsub.f32 %v131_v31, %v72_v26  ;;  %v1192_v42 = vld [vmem:[#allocation8 + $0x38] sm:$0xff]  ;;  %v162_v45 = vand.u32 2147483647, %v146_v35  ;;  %v1195_v46 = vld [vmem:[#allocation10 + $0x40] sm:$0xff]  ;;  %v148_v47 = vsub.f32 %v132_v36, %v73_v37  ;;  %v1202_v54 = vld [vmem:[#allocation10 + $0x48] sm:$0xff] }
  0x30   :  { %v74_v43 = vld [vmem:[#allocation5 + $0x38] sm:$0xff]  ;;  %v178_v44 = vsel %vm60_vm0, %v160_v33, 0.0  ;;  %v133_v48 = vmul.f32 %v1182_v34, %v1192_v42  ;;  %v1199_v49 = vld [vmem:[#allocation8 + $0x40] sm:$0xff]  ;;  %v193_v52 = vsel %vm60_vm0, %v161_v40, 0.0  ;;  %v1204_v55 = vld [vmem:[#allocation10 + $0x50] sm:$0xff] }
  0x31   :  { %v75_v50 = vld [vmem:[#allocation5 + $0x40] sm:$0xff]  ;;  %v179_v51 = vadd.f32 %v178_v44, %v177_v38  ;;  %v163_v53 = vand.u32 2147483647, %v147_v41  ;;  %v134_v56 = vmul.f32 %v1195_v46, %v1199_v49  ;;  %v194_v57 = vadd.f32 %v193_v52, %v192_v39  ;;  %v1209_v61 = vld [vmem:[#allocation10 + $0x58] sm:$0xff]  ;;  %v1211_v62 = vld [vmem:[#allocation8 + $0x48] sm:$0xff] }
  0x32   :  { %v180_v58 = vsel %vm60_vm0, %v162_v45, 0.0  ;;  %v164_v59 = vand.u32 2147483647, %v148_v47  ;;  %v149_v60 = vsub.f32 %v133_v48, %v74_v43  ;;  %v76_v63 = vld [vmem:[#allocation5 + $0x48] sm:$0xff]  ;;  %v135_v10 = vmul.f32 %v1202_v54, %v1211_v62  ;;  %v1220_v12 = vld [vmem:[#allocation10 + $0x60] sm:$0xff]  ;;  %v1224_v15 = vld [vmem:[#allocation8 + $0x50] sm:$0xff] }
  0x33   :  { %555 = vrot.lane.b32.xlu0 %v1146_v5, %s1090_s0  ;;  %558 = vrot.lane.b32.xlu1 %v1148_v7, %s1090_s0  ;;  %v181_v6 = vadd.f32 %v180_v58, %v179_v51  ;;  %v195_v8 = vsel %vm60_vm0, %v163_v53, 0.0  ;;  %v150_v9 = vsub.f32 %v134_v56, %v75_v50  ;;  %v1222_v13 = vld [vmem:[#allocation10 + $0x68] sm:$0xff]  ;;  %v77_v17 = vld [vmem:[#allocation5 + $0x50] sm:$0xff]  ;;  %v136_v23 = vmul.f32 %v1204_v55, %v1224_v15  ;;  %v1229_v24 = vld [vmem:[#allocation8 + $0x58] sm:$0xff] }
  0x34   :  { %v196_v18 = vadd.f32 %v195_v8, %v194_v57  ;;  %v182_v19 = vsel %vm60_vm0, %v164_v59, 0.0  ;;  %v165_v21 = vand.u32 2147483647, %v149_v60  ;;  %v78_v26 = vld [vmem:[#allocation5 + $0x58] sm:$0xff]  ;;  %v1231_v27 = vld [vmem:[#allocation8 + $0x60] sm:$0xff]  ;;  %v151_v31 = vsub.f32 %v135_v10, %v76_v63  ;;  %v1235_v36 = vld [vmem:[#allocation8 + $0x68] sm:$0xff] }
  0x35   :  { %v183_v28 = vadd.f32 %v182_v19, %v181_v6  ;;  %v166_v29 = vand.u32 2147483647, %v150_v9  ;;  %v137_v33 = vmul.f32 %v1209_v61, %v1229_v24  ;;  %v79_v35 = vld [vmem:[#allocation5 + $0x60] sm:$0xff]  ;;  %v80_v37 = vld [vmem:[#allocation5 + $0x68] sm:$0xff]  ;;  %v152_v39 = vsub.f32 %v136_v23, %v77_v17  ;;  %v1247_v48 = vld [vmem:[#allocation10 + $0x70] sm:$0xff] }
  0x36   :  { %v197_v38 = vsel %vm60_vm0, %v165_v21, 0.0  ;;  %v138_v40 = vmul.f32 %v1220_v12, %v1231_v27  ;;  %v139_v41 = vmul.f32 %v1222_v13, %v1235_v36  ;;  %v167_v45 = vand.u32 2147483647, %v151_v31  ;;  %v1249_v50 = vld [vmem:[#allocation10 + $0x78] sm:$0xff]  ;;  %v1251_v51 = vld [vmem:[#allocation8 + $0x70] sm:$0xff] }
  0x37   :  { %561 = vrot.lane.b32.xlu0 %v1154_v11, %s1090_s0  ;;  %564 = vrot.lane.b32.xlu1 %v1158_v14, %s1090_s0  ;;  %v198_v43 = vadd.f32 %v197_v38, %v196_v18  ;;  %v184_v44 = vsel %vm60_vm0, %v166_v29, 0.0  ;;  %v153_v47 = vsub.f32 %v137_v33, %v78_v26  ;;  %v168_v53 = vand.u32 2147483647, %v152_v39  ;;  %v81_v58 = vld [vmem:[#allocation5 + $0x70] sm:$0xff]  ;;  %v1253_v59 = vld [vmem:[#allocation8 + $0x78] sm:$0xff] }
  0x38   :  { %v185_v52 = vadd.f32 %v184_v44, %v183_v28  ;;  %v154_v56 = vsub.f32 %v138_v40, %v79_v35  ;;  %v155_v57 = vsub.f32 %v139_v41, %v80_v37  ;;  %v82_v60 = vld [vmem:[#allocation5 + $0x78] sm:$0xff]  ;;  %v199_v63 = vsel %vm60_vm0, %v167_v45, 0.0  ;;  %v174_v40 = vld [vmem:[#allocation2] sm:$0xff] }
  0x39   :  { %v169_v6 = vand.u32 2147483647, %v153_v47  ;;  %v140_v8 = vmul.f32 %v1247_v48, %v1251_v51  ;;  %v141_v9 = vmul.f32 %v1249_v50, %v1253_v59  ;;  %v200_v10 = vadd.f32 %v199_v63, %v198_v43  ;;  %v175_v43 = vld [vmem:[#allocation2 + $0x8] sm:$0xff] }
  0x3a   :  { %v186_v17 = vsel %vm60_vm0, %v168_v53, 0.0  ;;  %v170_v18 = vand.u32 2147483647, %v154_v56  ;;  %v171_v19 = vand.u32 2147483647, %v155_v57 }
  0x3b   :  { %232 = vrot.lane.b32.xlu0 %v1176_v30, %s1090_s0  ;;  %235 = vrot.lane.b32.xlu1 %v1182_v34, %s1090_s0  ;;  %v187_v21 = vadd.f32 %v186_v17, %v185_v52  ;;  %v201_v23 = vsel %vm60_vm0, %v169_v6, 0.0  ;;  %v156_v26 = vsub.f32 %v140_v8, %v81_v58  ;;  %v157_v28 = vsub.f32 %v141_v9, %v82_v60 }
  0x3c   :  { %v202_v29 = vadd.f32 %v201_v23, %v200_v10  ;;  %v188_v31 = vsel %vm60_vm0, %v170_v18, 0.0  ;;  %v203_v33 = vsel %vm60_vm0, %v171_v19, 0.0 }
  0x3d   :  { %v189_v35 = vadd.f32 %v188_v31, %v187_v21  ;;  %v172_v37 = vand.u32 2147483647, %v156_v26  ;;  %v173_v38 = vand.u32 2147483647, %v157_v28 }
  0x3e   :  { %v204_v39 = vadd.f32 %v203_v33, %v202_v29 }
  0x3f   :  { %567 = vrot.lane.b32.xlu0 %v1168_v20, %s1090_s0  ;;  %570 = vrot.lane.b32.xlu1 %v1174_v25, %s1090_s0  ;;  %v190_v41 = vsel %vm60_vm0, %v172_v37, 0.0  ;;  %v205_v44 = vsel %vm60_vm0, %v173_v38, 0.0 }
  0x40   :  { %v191_v45 = vadd.f32 %v190_v41, %v189_v35  ;;  %v206_v47 = vadd.f32 %v205_v44, %v204_v39 }
  0x42   :  { %v207_v52 = vadd.f32 %v191_v45, %v174_v40  ;;  %v208_v53 = vadd.f32 %v206_v47, %v175_v43 }
  0x43   :  { %238 = vrot.lane.b32.xlu0 %v1195_v46, %s1090_s0  ;;  %241 = vrot.lane.b32.xlu1 %v1202_v54, %s1090_s0 }
  0x44   :  { %209 = vst.msk [vmem:[#allocation2] sm:$0xff] %vm60_vm0, %v207_v52  ;;  %210 = vst.msk [vmem:[#allocation2 + $0x8] sm:$0xff] %vm60_vm0, %v208_v53 }
  0x47   :  { %573 = vrot.lane.b32.xlu0 %v1180_v32, %s1090_s0  ;;  %576 = vrot.lane.b32.xlu1 %v1192_v42, %s1090_s0 }
  0x4b   :  { %244 = vrot.lane.b32.xlu0 %v1204_v55, %s1090_s0  ;;  %247 = vrot.lane.b32.xlu1 %v1209_v61, %s1090_s0 }
  0x4f   :  { %579 = vrot.lane.b32.xlu0 %v1199_v49, %s1090_s0  ;;  %582 = vrot.lane.b32.xlu1 %v1211_v62, %s1090_s0 }
  0x53   :  { %250 = vrot.lane.b32.xlu0 %v1220_v12, %s1090_s0  ;;  %253 = vrot.lane.b32.xlu1 %v1222_v13, %s1090_s0 }
  0x57   :  { %585 = vrot.lane.b32.xlu0 %v1224_v15, %s1090_s0  ;;  %588 = vrot.lane.b32.xlu1 %v1229_v24, %s1090_s0 }
  0x5b   :  { %256 = vrot.lane.b32.xlu0 %v1247_v48, %s1090_s0  ;;  %259 = vrot.lane.b32.xlu1 %v1249_v50, %s1090_s0 }
  0x5f   :  { %591 = vrot.lane.b32.xlu0 %v1231_v27, %s1090_s0  ;;  %594 = vrot.lane.b32.xlu1 %v1235_v36, %s1090_s0 }
  0x63   :  { %597 = vrot.lane.b32.xlu0 %v1251_v51, %s1090_s0  ;;  %600 = vrot.lane.b32.xlu1 %v1253_v59, %s1090_s0 }
  0x99   :  { %v215_v56 = vpop.permute.xlu0 %214  ;;  %v221_v57 = vpop.permute.xlu1 %220 }
  0x9a   :  { %v216_v58 = vsel %vm213_vm1, %v215_v56, %v1134_v1  ;;  %v222_v60 = vsel %vm213_vm1, %v221_v57, %v1136_v2 }
  0x9b   :  { %262 = vrot.lane.b32.xlu0 %v216_v58, %s1090_s0 }
  0x9d   :  { %v218_v63 = vpop.permute.xlu0 %217  ;;  %v224_v6 = vpop.permute.xlu1 %223 }
  0x9e   :  { %v219_v8 = vsel %vm213_vm1, %v218_v63, %v1142_v3  ;;  %v225_v9 = vsel %vm213_vm1, %v224_v6, %v1144_v4 }
  0x9f   :  { %264 = vrot.lane.b32.xlu1 %v219_v8, %s1090_s0  ;;  %266 = vrot.lane.b32.xlu0 %v222_v60, %s1090_s0 }
  0xa1   :  { %v227_v10 = vpop.permute.xlu0 %226  ;;  %v230_v17 = vpop.permute.xlu1 %229 }
  0xa2   :  { %v228_v18 = vsel %vm213_vm1, %v227_v10, %v1164_v16  ;;  %v231_v19 = vsel %vm213_vm1, %v230_v17, %v1170_v22 }
  0xa3   :  { %268 = vrot.lane.b32.xlu1 %v225_v9, %s1090_s0  ;;  %270 = vrot.lane.b32.xlu0 %v228_v18, %s1090_s0 }
  0xa5   :  { %v556_v21 = vpop.permute.xlu0 %555  ;;  %v559_v23 = vpop.permute.xlu1 %558 }
  0xa6   :  { %v557_v26 = vsel %vm213_vm1, %v556_v21, %v1146_v5  ;;  %v560_v28 = vsel %vm213_vm1, %v559_v23, %v1148_v7 }
  0xa7   :  { %272 = vrot.lane.b32.xlu1 %v231_v19, %s1090_s0  ;;  %603 = vrot.lane.b32.xlu0 %v557_v26, %s1090_s0 }
  0xa9   :  { %v562_v29 = vpop.permute.xlu0 %561  ;;  %v565_v31 = vpop.permute.xlu1 %564 }
  0xaa   :  { %v563_v33 = vsel %vm213_vm1, %v562_v29, %v1154_v11  ;;  %v566_v35 = vsel %vm213_vm1, %v565_v31, %v1158_v14 }
  0xab   :  { %605 = vrot.lane.b32.xlu1 %v560_v28, %s1090_s0  ;;  %607 = vrot.lane.b32.xlu0 %v563_v33, %s1090_s0 }
  0xad   :  { %v233_v37 = vpop.permute.xlu0 %232  ;;  %v236_v38 = vpop.permute.xlu1 %235 }
  0xae   :  { %v234_v39 = vsel %vm213_vm1, %v233_v37, %v1176_v30  ;;  %v237_v40 = vsel %vm213_vm1, %v236_v38, %v1182_v34 }
  0xaf   :  { %609 = vrot.lane.b32.xlu1 %v566_v35, %s1090_s0  ;;  %274 = vrot.lane.b32.xlu0 %v234_v39, %s1090_s0 }
  0xb1   :  { %v568_v41 = vpop.permute.xlu0 %567  ;;  %v571_v43 = vpop.permute.xlu1 %570 }
  0xb2   :  { %v569_v44 = vsel %vm213_vm1, %v568_v41, %v1168_v20  ;;  %v572_v45 = vsel %vm213_vm1, %v571_v43, %v1174_v25 }
  0xb3   :  { %276 = vrot.lane.b32.xlu1 %v237_v40, %s1090_s0  ;;  %611 = vrot.lane.b32.xlu0 %v569_v44, %s1090_s0 }
  0xb5   :  { %v239_v47 = vpop.permute.xlu0 %238  ;;  %v242_v52 = vpop.permute.xlu1 %241 }
  0xb6   :  { %v240_v53 = vsel %vm213_vm1, %v239_v47, %v1195_v46  ;;  %v243_v56 = vsel %vm213_vm1, %v242_v52, %v1202_v54 }
  0xb7   :  { %613 = vrot.lane.b32.xlu1 %v572_v45, %s1090_s0  ;;  %278 = vrot.lane.b32.xlu0 %v240_v53, %s1090_s0 }
  0xb9   :  { %v574_v57 = vpop.permute.xlu0 %573  ;;  %v577_v58 = vpop.permute.xlu1 %576 }
  0xba   :  { %v575_v60 = vsel %vm213_vm1, %v574_v57, %v1180_v32  ;;  %v578_v63 = vsel %vm213_vm1, %v577_v58, %v1192_v42 }
  0xbb   :  { %280 = vrot.lane.b32.xlu1 %v243_v56, %s1090_s0  ;;  %615 = vrot.lane.b32.xlu0 %v575_v60, %s1090_s0 }
  0xbd   :  { %v245_v6 = vpop.permute.xlu0 %244  ;;  %v248_v8 = vpop.permute.xlu1 %247 }
  0xbe   :  { %v246_v9 = vsel %vm213_vm1, %v245_v6, %v1204_v55  ;;  %v249_v10 = vsel %vm213_vm1, %v248_v8, %v1209_v61 }
  0xbf   :  { %617 = vrot.lane.b32.xlu1 %v578_v63, %s1090_s0  ;;  %282 = vrot.lane.b32.xlu0 %v246_v9, %s1090_s0 }
  0xc1   :  { %v580_v17 = vpop.permute.xlu0 %579  ;;  %v583_v18 = vpop.permute.xlu1 %582 }
  0xc2   :  { %v581_v19 = vsel %vm213_vm1, %v580_v17, %v1199_v49  ;;  %v584_v21 = vsel %vm213_vm1, %v583_v18, %v1211_v62 }
  0xc3   :  { %284 = vrot.lane.b32.xlu1 %v249_v10, %s1090_s0  ;;  %619 = vrot.lane.b32.xlu0 %v581_v19, %s1090_s0 }
  0xc5   :  { %v251_v23 = vpop.permute.xlu0 %250  ;;  %v254_v26 = vpop.permute.xlu1 %253 }
  0xc6   :  { %v252_v28 = vsel %vm213_vm1, %v251_v23, %v1220_v12  ;;  %v255_v29 = vsel %vm213_vm1, %v254_v26, %v1222_v13 }
  0xc7   :  { %621 = vrot.lane.b32.xlu1 %v584_v21, %s1090_s0  ;;  %286 = vrot.lane.b32.xlu0 %v252_v28, %s1090_s0 }
  0xc9   :  { %v586_v31 = vpop.permute.xlu0 %585  ;;  %v589_v33 = vpop.permute.xlu1 %588 }
  0xca   :  { %v587_v35 = vsel %vm213_vm1, %v586_v31, %v1224_v15  ;;  %v590_v37 = vsel %vm213_vm1, %v589_v33, %v1229_v24 }
  0xcb   :  { %288 = vrot.lane.b32.xlu1 %v255_v29, %s1090_s0  ;;  %623 = vrot.lane.b32.xlu0 %v587_v35, %s1090_s0 }
  0xcd   :  { %v257_v38 = vpop.permute.xlu0 %256  ;;  %v260_v39 = vpop.permute.xlu1 %259 }
  0xce   :  { %v258_v40 = vsel %vm213_vm1, %v257_v38, %v1247_v48  ;;  %v261_v41 = vsel %vm213_vm1, %v260_v39, %v1249_v50 }
  0xcf   :  { %625 = vrot.lane.b32.xlu1 %v590_v37, %s1090_s0  ;;  %290 = vrot.lane.b32.xlu0 %v258_v40, %s1090_s0 }
  0xd1   :  { %v592_v43 = vpop.permute.xlu0 %591  ;;  %v595_v44 = vpop.permute.xlu1 %594 }
  0xd2   :  { %v593_v45 = vsel %vm213_vm1, %v592_v43, %v1231_v27  ;;  %v596_v47 = vsel %vm213_vm1, %v595_v44, %v1235_v36 }
  0xd3   :  { %292 = vrot.lane.b32.xlu1 %v261_v41, %s1090_s0  ;;  %627 = vrot.lane.b32.xlu0 %v593_v45, %s1090_s0 }
  0xd5   :  { %v598_v52 = vpop.permute.xlu0 %597  ;;  %v601_v53 = vpop.permute.xlu1 %600 }
  0xd6   :  { %v599_v56 = vsel %vm213_vm1, %v598_v52, %v1251_v51  ;;  %v602_v57 = vsel %vm213_vm1, %v601_v53, %v1253_v59 }
  0xd7   :  { %629 = vrot.lane.b32.xlu1 %v596_v47, %s1090_s0  ;;  %631 = vrot.lane.b32.xlu0 %v599_v56, %s1090_s0 }
  0xdb   :  { %633 = vrot.lane.b32.xlu1 %v602_v57, %s1090_s0 }
 0x10d   :  { %v263_v58 = vpop.permute.xlu0 %262 }
 0x10e   :  { %v294_v60 = vsel %vm213_vm1, %v263_v58, %v1134_v1 }
 0x10f   :  { %326 = vrot.lane.b32.xlu0 %v294_v60, %s1091_s2 }
 0x111   :  { %v265_v63 = vpop.permute.xlu1 %264  ;;  %v267_v6 = vpop.permute.xlu0 %266 }
 0x112   :  { %v295_v8 = vsel %vm213_vm1, %v265_v63, %v1142_v3  ;;  %v296_v9 = vsel %vm213_vm1, %v267_v6, %v1136_v2 }
 0x113   :  { %328 = vrot.lane.b32.xlu1 %v295_v8, %s1091_s2  ;;  %330 = vrot.lane.b32.xlu0 %v296_v9, %s1091_s2 }
 0x115   :  { %v269_v10 = vpop.permute.xlu1 %268  ;;  %v271_v17 = vpop.permute.xlu0 %270 }
 0x116   :  { %v297_v18 = vsel %vm213_vm1, %v269_v10, %v1144_v4  ;;  %v298_v19 = vsel %vm213_vm1, %v271_v17, %v1164_v16 }
 0x117   :  { %332 = vrot.lane.b32.xlu1 %v297_v18, %s1091_s2  ;;  %334 = vrot.lane.b32.xlu0 %v298_v19, %s1091_s2 }
 0x119   :  { %v273_v21 = vpop.permute.xlu1 %272  ;;  %v604_v23 = vpop.permute.xlu0 %603 }
 0x11a   :  { %v299_v26 = vsel %vm213_vm1, %v273_v21, %v1170_v22  ;;  %v635_v28 = vsel %vm213_vm1, %v604_v23, %v1146_v5 }
 0x11b   :  { %336 = vrot.lane.b32.xlu1 %v299_v26, %s1091_s2  ;;  %667 = vrot.lane.b32.xlu0 %v635_v28, %s1091_s2 }
 0x11d   :  { %v606_v29 = vpop.permute.xlu1 %605  ;;  %v608_v31 = vpop.permute.xlu0 %607 }
 0x11e   :  { %v636_v33 = vsel %vm213_vm1, %v606_v29, %v1148_v7  ;;  %v637_v35 = vsel %vm213_vm1, %v608_v31, %v1154_v11 }
 0x11f   :  { %669 = vrot.lane.b32.xlu1 %v636_v33, %s1091_s2  ;;  %671 = vrot.lane.b32.xlu0 %v637_v35, %s1091_s2 }
 0x121   :  { %v610_v37 = vpop.permute.xlu1 %609  ;;  %v275_v38 = vpop.permute.xlu0 %274 }
 0x122   :  { %v638_v39 = vsel %vm213_vm1, %v610_v37, %v1158_v14  ;;  %v300_v40 = vsel %vm213_vm1, %v275_v38, %v1176_v30 }
 0x123   :  { %673 = vrot.lane.b32.xlu1 %v638_v39, %s1091_s2  ;;  %338 = vrot.lane.b32.xlu0 %v300_v40, %s1091_s2 }
 0x125   :  { %v277_v41 = vpop.permute.xlu1 %276  ;;  %v612_v43 = vpop.permute.xlu0 %611 }
 0x126   :  { %v301_v44 = vsel %vm213_vm1, %v277_v41, %v1182_v34  ;;  %v639_v45 = vsel %vm213_vm1, %v612_v43, %v1168_v20 }
 0x127   :  { %340 = vrot.lane.b32.xlu1 %v301_v44, %s1091_s2  ;;  %675 = vrot.lane.b32.xlu0 %v639_v45, %s1091_s2 }
 0x129   :  { %v614_v47 = vpop.permute.xlu1 %613  ;;  %v279_v52 = vpop.permute.xlu0 %278 }
 0x12a   :  { %v640_v53 = vsel %vm213_vm1, %v614_v47, %v1174_v25  ;;  %v302_v56 = vsel %vm213_vm1, %v279_v52, %v1195_v46 }
 0x12b   :  { %677 = vrot.lane.b32.xlu1 %v640_v53, %s1091_s2  ;;  %342 = vrot.lane.b32.xlu0 %v302_v56, %s1091_s2 }
 0x12d   :  { %v281_v57 = vpop.permute.xlu1 %280  ;;  %v616_v58 = vpop.permute.xlu0 %615 }
 0x12e   :  { %v303_v60 = vsel %vm213_vm1, %v281_v57, %v1202_v54  ;;  %v641_v63 = vsel %vm213_vm1, %v616_v58, %v1180_v32 }
 0x12f   :  { %344 = vrot.lane.b32.xlu1 %v303_v60, %s1091_s2  ;;  %679 = vrot.lane.b32.xlu0 %v641_v63, %s1091_s2  ;;  %v896_v63 = vld [vmem:[#allocation2] sm:$0xff] }
 0x131   :  { %v618_v6 = vpop.permute.xlu1 %617  ;;  %v283_v8 = vpop.permute.xlu0 %282 }
 0x132   :  { %v642_v9 = vsel %vm213_vm1, %v618_v6, %v1192_v42  ;;  %v304_v10 = vsel %vm213_vm1, %v283_v8, %v1204_v55  ;;  %v897_v6 = vld [vmem:[#allocation2 + $0x8] sm:$0xff]  ;;  %v115_v8 = vlaneseq }
 0x133   :  { %681 = vrot.lane.b32.xlu1 %v642_v9, %s1091_s2  ;;  %346 = vrot.lane.b32.xlu0 %v304_v10, %s1091_s2  ;;  %v898_v9 = vsel %vm60_vm0, %v896_v63, 0.0  ;;  %v899_v10 = vsel %vm60_vm0, %v897_v6, 0.0 }
 0x135   :  { %v285_v17 = vpop.permute.xlu1 %284  ;;  %v620_v18 = vpop.permute.xlu0 %619 }
 0x136   :  { %v305_v19 = vsel %vm213_vm1, %v285_v17, %v1209_v61  ;;  %v643_v21 = vsel %vm213_vm1, %v620_v18, %v1199_v49  ;;  %v900_v17 = vadd.f32 %v899_v10, %v898_v9  ;;  %v1506_v18 = vshrl.u32 %v115_v8, 7 }
 0x137   :  { %348 = vrot.lane.b32.xlu1 %v305_v19, %s1091_s2  ;;  %683 = vrot.lane.b32.xlu0 %v643_v21, %s1091_s2  ;;  %v406_v19 = vrot.slane %v1134_v1, 1  ;;  %v414_v21 = vrot.slane %v1142_v3, 1  ;;  %v417_v9 = vrot.slane %v1182_v34, 1 }
 0x138   :  { %vm422_vm2 = vcmp.lt.s32.totalorder %v1506_v18, 7 }
 0x139   :  { %v622_v23 = vpop.permute.xlu1 %621  ;;  %v287_v26 = vpop.permute.xlu0 %286 }
 0x13a   :  { %v644_v28 = vsel %vm213_vm1, %v622_v23, %v1211_v62  ;;  %v306_v29 = vsel %vm213_vm1, %v287_v26, %v1220_v12  ;;  %v407_v23 = vrot.slane %v1136_v2, 1  ;;  %v415_v26 = vrot.slane %v1144_v4, 1 }
 0x13b   :  { %685 = vrot.lane.b32.xlu1 %v644_v28, %s1091_s2  ;;  %350 = vrot.lane.b32.xlu0 %v306_v29, %s1091_s2  ;;  %v423_v28 = vsel %vm422_vm2, %v406_v19, %v414_v21  ;;  %v408_v29 = vrot.slane %v1164_v16, 1 }
 0x13d   :  { %v289_v31 = vpop.permute.xlu1 %288  ;;  %v624_v33 = vpop.permute.xlu0 %623 }
 0x13e   :  { %v307_v35 = vsel %vm213_vm1, %v289_v31, %v1222_v13  ;;  %v645_v37 = vsel %vm213_vm1, %v624_v33, %v1224_v15  ;;  %v416_v31 = vrot.slane %v1170_v22, 1  ;;  %v116_v33 = vand.u32 127, %v115_v8 }
 0x13f   :  { %352 = vrot.lane.b32.xlu1 %v307_v35, %s1091_s2  ;;  %687 = vrot.lane.b32.xlu0 %v645_v37, %s1091_s2  ;;  %v431_v35 = vsel %vm422_vm2, %v414_v21, %v406_v19  ;;  %v119_v37 = vadd.s32 8, %v1506_v18  ;;  %v409_v8 = vrot.slane %v1176_v30, 1  ;;  %v983_v18 = vld [vmem:[#allocation10 + $0x28] sm:$0xff] }
 0x140   :  { %vm120_vm3 = vcmp.lt.s32.totalorder %v116_v33, 15 }
 0x141   :  { %v626_v38 = vpop.permute.xlu1 %625  ;;  %v291_v39 = vpop.permute.xlu0 %290  ;;  %vm123_vm4 = vcmp.lt.s32.totalorder %v119_v37, 15  ;;  %v1543_v10 = vsel %vm120_vm3, 0.00052083336, %v1089_v0  ;;  %v434_v37 = vsel %vm422_vm2, %v417_v9, %v409_v8 }
 0x142   :  { %v646_v40 = vsel %vm213_vm1, %v626_v38, %v1229_v24  ;;  %v308_v41 = vsel %vm213_vm1, %v291_v39, %v1247_v48  ;;  %v424_v38 = vsel %vm422_vm2, %v407_v23, %v415_v26  ;;  %v755_v39 = vrot.slane %v1148_v7, 1 }
 0x143   :  { %689 = vrot.lane.b32.xlu1 %v646_v40, %s1091_s2  ;;  %354 = vrot.lane.b32.xlu0 %v308_v41, %s1091_s2  ;;  %v747_v40 = vrot.slane %v1146_v5, 1  ;;  %v439_v41 = vsub.f32 %v1134_v1, %v423_v28 }
 0x145   :  { %v293_v43 = vpop.permute.xlu1 %292  ;;  %v628_v44 = vpop.permute.xlu0 %627 }
 0x146   :  { %v309_v45 = vsel %vm213_vm1, %v293_v43, %v1249_v50  ;;  %v647_v47 = vsel %vm213_vm1, %v628_v44, %v1231_v27  ;;  %v440_v43 = vsub.f32 %v1142_v3, %v431_v35  ;;  %v432_v44 = vsel %vm422_vm2, %v415_v26, %v407_v23 }
 0x147   :  { %356 = vrot.lane.b32.xlu1 %v309_v45, %s1091_s2  ;;  %691 = vrot.lane.b32.xlu0 %v647_v47, %s1091_s2  ;;  %v425_v45 = vsel %vm422_vm2, %v408_v29, %v416_v31  ;;  %v441_v47 = vsub.f32 %v1136_v2, %v424_v38  ;;  %v756_v3 = vrot.slane %v1158_v14, 1  ;;  %v757_v26 = vrot.slane %v1174_v25, 1 }
 0x148   :  { %v456_v63 = vand.u32 2147483647, %v440_v43  ;;  %v426_v35 = vsel %vm422_vm2, %v409_v8, %v417_v9  ;;  %v419_v9 = vrot.slane %v1209_v61, 1 }
 0x149   :  { %v630_v52 = vpop.permute.xlu1 %629  ;;  %v632_v53 = vpop.permute.xlu0 %631  ;;  %v457_v19 = vand.u32 2147483647, %v441_v47  ;;  %v418_v47 = vrot.slane %v1202_v54, 1 }
 0x14a   :  { %v648_v56 = vsel %vm213_vm1, %v630_v52, %v1235_v36  ;;  %v649_v57 = vsel %vm213_vm1, %v632_v53, %v1251_v51  ;;  %v433_v52 = vsel %vm422_vm2, %v416_v31, %v408_v29  ;;  %v763_v53 = vsel %vm422_vm2, %v747_v40, %v755_v39 }
 0x14b   :  { %693 = vrot.lane.b32.xlu1 %v648_v56, %s1091_s2  ;;  %695 = vrot.lane.b32.xlu0 %v649_v57, %s1091_s2  ;;  %v748_v56 = vrot.slane %v1154_v11, 1  ;;  %v455_v57 = vand.u32 2147483647, %v439_v41  ;;  %v444_v6 = vsub.f32 %v1170_v22, %v433_v52  ;;  %v779_v21 = vsub.f32 %v1146_v5, %v763_v53 }
 0x14c   :  { %v749_v22 = vrot.slane %v1168_v20, 1  ;;  %v1566_v38 = vmul.f32 0.00052083336, %v457_v19 }
 0x14d   :  { %v634_v58 = vpop.permute.xlu1 %633  ;;  %v764_v23 = vsel %vm422_vm2, %v748_v56, %v756_v3  ;;  %v1555_v28 = vmul.f32 0.00052083336, %v455_v57  ;;  %v460_v5 = vand.u32 2147483647, %v444_v6  ;;  %v758_v57 = vrot.slane %v1192_v42, 1 }
 0x14e   :  { %v650_v60 = vsel %vm213_vm1, %v634_v58, %v1253_v59  ;;  %v442_v58 = vsub.f32 %v1144_v4, %v432_v44  ;;  %v771_v4 = vsel %vm422_vm2, %v755_v39, %v747_v40  ;;  %v795_v39 = vand.u32 2147483647, %v779_v21 }
 0x14f   :  { %697 = vrot.lane.b32.xlu1 %v650_v60, %s1091_s2  ;;  %v443_v60 = vsub.f32 %v1164_v16, %v425_v45  ;;  %v780_v40 = vsub.f32 %v1148_v7, %v771_v4  ;;  %v781_v41 = vsub.f32 %v1154_v11, %v764_v23  ;;  %v765_v44 = vsel %vm422_vm2, %v749_v22, %v757_v26 }
 0x150   :  { %v458_v29 = vand.u32 2147483647, %v442_v58  ;;  %v410_v45 = vrot.slane %v1195_v46, 1  ;;  %v446_v7 = vsub.f32 %v1182_v34, %v434_v37  ;;  %v1589_v58 = vmul.f32 0.00052083336, %v795_v39 }
 0x151   :  { %v459_v31 = vand.u32 2147483647, %v443_v60  ;;  %v796_v60 = vand.u32 2147483647, %v780_v40  ;;  %v783_v6 = vsub.f32 %v1168_v20, %v765_v44  ;;  %v411_v34 = vrot.slane %v1204_v55, 1 }
 0x152   :  { %v462_v4 = vand.u32 2147483647, %v446_v7  ;;  %v412_v40 = vrot.slane %v1220_v12, 1 }
 0x153   :  { %v1578_v53 = vmul.f32 0.00052083336, %v459_v31  ;;  %v759_v31 = vrot.slane %v1211_v62, 1  ;;  %v428_v39 = vsel %vm422_vm2, %v411_v34, %v419_v9 }
 0x16a   :  { %901 = vadd.xlane.f32.xlu0 %v900_v17  ;;  %v1546_v17 = vsel %vm123_vm4, 0.00052083336, %v1089_v0  ;;  %v772_v0 = vsel %vm422_vm2, %v756_v3, %v748_v56  ;;  %v445_v56 = vsub.f32 %v1176_v30, %v426_v35  ;;  %v750_v3 = vrot.slane %v1180_v32, 1 }
 0x16b   :  { %v1560_v33 = vmul.f32 %v456_v63, %v1546_v17  ;;  %v782_v43 = vsub.f32 %v1158_v14, %v772_v0  ;;  %v1576_v52 = vmul.f32 %v458_v29, %v1546_v17  ;;  %v1583_v11 = vmul.f32 %v460_v5, %v1546_v17 }
 0x16c   :  { %v773_v14 = vsel %vm422_vm2, %v757_v26, %v749_v22  ;;  %v797_v63 = vand.u32 2147483647, %v781_v41  ;;  %v427_v30 = vsel %vm422_vm2, %v410_v45, %v418_v47  ;;  %v461_v21 = vand.u32 2147483647, %v445_v56 }
 0x16d   :  { %v798_v8 = vand.u32 2147483647, %v782_v43  ;;  %v784_v23 = vsub.f32 %v1174_v25, %v773_v14  ;;  %v435_v22 = vsel %vm422_vm2, %v418_v47, %v410_v45  ;;  %v766_v20 = vsel %vm422_vm2, %v750_v3, %v758_v57 }
 0x16e   :  { %v774_v26 = vsel %vm422_vm2, %v758_v57, %v750_v3  ;;  %v751_v29 = vrot.slane %v1199_v49, 1  ;;  %v1608_v0 = vmul.f32 %v796_v60, %v1546_v17  ;;  %v1610_v5 = vmul.f32 0.00052083336, %v797_v63 }
 0x16f   :  { %v799_v35 = vand.u32 2147483647, %v783_v6  ;;  %v447_v25 = vsub.f32 %v1195_v46, %v427_v30  ;;  %v448_v37 = vsub.f32 %v1202_v54, %v435_v22  ;;  %v420_v41 = vrot.slane %v1222_v13, 1 }
 0x170   :  { %v1623_v45 = vmul.f32 %v798_v8, %v1546_v17  ;;  %v1625_v47 = vmul.f32 0.00052083336, %v461_v21  ;;  %v785_v46 = vsub.f32 %v1180_v32, %v766_v20  ;;  %v786_v54 = vsub.f32 %v1192_v42, %v774_v26 }
 0x171   :  { %v1630_v56 = vmul.f32 %v462_v4, %v1546_v17  ;;  %v800_v7 = vand.u32 2147483647, %v784_v23  ;;  %v436_v14 = vsel %vm422_vm2, %v419_v9, %v411_v34  ;;  %v767_v3 = vsel %vm422_vm2, %v751_v29, %v759_v31 }
 0x172   :  { %v1636_v57 = vmul.f32 0.00052083336, %v799_v35  ;;  %v463_v60 = vand.u32 2147483647, %v447_v25  ;;  %v449_v63 = vsub.f32 %v1204_v55, %v428_v39  ;;  %v775_v32 = vsel %vm422_vm2, %v759_v31, %v751_v29 }
 0x173   :  { %v464_v6 = vand.u32 2147483647, %v448_v37  ;;  %v429_v42 = vsel %vm422_vm2, %v412_v40, %v420_v41  ;;  %v752_v8 = vrot.slane %v1224_v15, 1  ;;  %v760_v30 = vrot.slane %v1229_v24, 1 }
 0x174   :  { %v801_v21 = vand.u32 2147483647, %v785_v46  ;;  %v802_v4 = vand.u32 2147483647, %v786_v54  ;;  %v450_v23 = vsub.f32 %v1209_v61, %v436_v14  ;;  %v787_v55 = vsub.f32 %v1199_v49, %v767_v3 }
 0x175   :  { %v1652_v22 = vmul.f32 %v800_v7, %v1546_v17  ;;  %v788_v20 = vsub.f32 %v1211_v62, %v775_v32  ;;  %v413_v26 = vrot.slane %v1247_v48, 1  ;;  %v421_v29 = vrot.slane %v1249_v50, 1 }
 0x176   :  { %v1657_v31 = vmul.f32 0.00052083336, %v463_v60  ;;  %v465_v35 = vand.u32 2147483647, %v449_v63  ;;  %v451_v25 = vsub.f32 %v1220_v12, %v429_v42  ;;  %v437_v37 = vsel %vm422_vm2, %v420_v41, %v412_v40 }
 0x177   :  { %v1663_v61 = vmul.f32 %v464_v6, %v1546_v17  ;;  %v768_v49 = vsel %vm422_vm2, %v752_v8, %v760_v30  ;;  %v753_v62 = vrot.slane %v1231_v27, 1  ;;  %v761_v39 = vrot.slane %v1235_v36, 1 }
 0x178   :  { %v1673_v7 = vmul.f32 0.00052083336, %v801_v21  ;;  %v1676_v12 = vmul.f32 %v802_v4, %v1546_v17  ;;  %v466_v40 = vand.u32 2147483647, %v450_v23  ;;  %v803_v41 = vand.u32 2147483647, %v787_v55 }
 0x179   :  { %v804_v14 = vand.u32 2147483647, %v788_v20  ;;  %v452_v3 = vsub.f32 %v1222_v13, %v437_v37  ;;  %v776_v60 = vsel %vm422_vm2, %v760_v30, %v752_v8  ;;  %v430_v63 = vsel %vm422_vm2, %v413_v26, %v421_v29 }
 0x17a   :  { %v1683_v32 = vmul.f32 0.00052083336, %v465_v35  ;;  %v467_v6 = vand.u32 2147483647, %v451_v25  ;;  %v789_v42 = vsub.f32 %v1224_v15, %v768_v49  ;;  %v438_v21 = vsel %vm422_vm2, %v421_v29, %v413_v26 }
 0x17b   :  { %v769_v13 = vsel %vm422_vm2, %v753_v62, %v761_v39  ;;  %v754_v23 = vrot.slane %v1251_v51, 1  ;;  %v762_v8 = vrot.slane %v1253_v59, 1  ;;  %v1701_v15 = vmul.f32 %v466_v40, %v1546_v17 }
 0x17c   :  { %v790_v26 = vsub.f32 %v1229_v24, %v776_v60  ;;  %v1708_v29 = vmul.f32 %v804_v14, %v1546_v17  ;;  %v468_v35 = vand.u32 2147483647, %v452_v3  ;;  %v454_v25 = vsub.f32 %v1249_v50, %v438_v21 }
 0x17d   :  { %v805_v37 = vand.u32 2147483647, %v789_v42  ;;  %v791_v49 = vsub.f32 %v1231_v27, %v769_v13  ;;  %v777_v40 = vsel %vm422_vm2, %v761_v39, %v753_v62  ;;  %v770_v14 = vsel %vm422_vm2, %v754_v23, %v762_v8  ;;  %v982_v42 = vld [vmem:[#allocation10 + $0x8] sm:$0xff] }
 0x17e   :  { %v778_v27 = vsel %vm422_vm2, %v762_v8, %v754_v23  ;;  %v1727_v39 = vmul.f32 %v468_v35, %v1546_v17  ;;  %v793_v13 = vsub.f32 %v1251_v51, %v770_v14 }
 0x17f   :  { %v1730_v21 = vmul.f32 0.00052083336, %v805_v37  ;;  %v985_v37 = vld [vmem:[#allocation8 + $0x10] sm:$0xff] }
 0x180   :  { %v809_v14 = vand.u32 2147483647, %v793_v13 }
 0x181   :  { %v1596_v19 = vpop.permute.xlu0 %326 }
 0x182   :  { %v374_v30 = vsub.f32 %v1134_v1, %v1596_v19  ;;  %v981_v1 = vld [vmem:[#allocation10 + $0x18] sm:$0xff] }
 0x184   :  { %v390_v3 = vand.u32 2147483647, %v374_v30 }
 0x185   :  { %v1618_v43 = vpop.permute.xlu1 %328  ;;  %v1620_v44 = vpop.permute.xlu0 %330 }
 0x186   :  { %v376_v4 = vsub.f32 %v1136_v2, %v1620_v44  ;;  %v453_v2 = vsub.f32 %v1247_v48, %v430_v63  ;;  %v1705_v44 = vmul.f32 0.00052083336, %v803_v41  ;;  %v1717_v41 = vmul.f32 0.00052083336, %v467_v6 }
 0x187   :  { %v375_v62 = vsub.f32 %v982_v42, %v1618_v43  ;;  %v794_v43 = vsub.f32 %v1253_v59, %v778_v27  ;;  %v471_v8 = vmul.f32 %v390_v3, %v1543_v10 }
 0x188   :  { %v392_v24 = vand.u32 2147483647, %v376_v4  ;;  %v469_v63 = vand.u32 2147483647, %v453_v2  ;;  %v807_v4 = vand.u32 2147483647, %v791_v49 }
 0x189   :  { %v1645_v34 = vpop.permute.xlu1 %332  ;;  %v1647_v9 = vpop.permute.xlu0 %334  ;;  %v984_v2 = vld [vmem:[#allocation8] sm:$0xff]  ;;  %v391_v51 = vand.u32 2147483647, %v375_v62  ;;  %v810_v27 = vand.u32 2147483647, %v794_v43  ;;  %v503_v42 = vadd.f32 %v1555_v28, %v471_v8  ;;  %v987_v62 = vld [vmem:[#allocation8 + $0x8] sm:$0xff] }
 0x18a   :  { %v377_v19 = vsub.f32 %v981_v1, %v1645_v34  ;;  %v378_v48 = vsub.f32 %v1164_v16, %v1647_v9  ;;  %v806_v34 = vand.u32 2147483647, %v790_v26  ;;  %v470_v16 = vand.u32 2147483647, %v454_v25 }
 0x18b   :  { %v792_v9 = vsub.f32 %v1235_v36, %v777_v40  ;;  %v473_v30 = vmul.f32 %v392_v24, %v1543_v10  ;;  %v986_v24 = vld [vmem:[#allocation8 + $0x18] sm:$0xff]  ;;  %v1760_v8 = vmul.f32 0.00052083336, %v809_v14  ;;  %v991_v14 = vld [vmem:[#allocation8 + $0x28] sm:$0xff] }
 0x18c   :  { %v393_v6 = vand.u32 2147483647, %v377_v19  ;;  %v394_v26 = vand.u32 2147483647, %v378_v48  ;;  %v1739_v1 = vmul.f32 %v806_v34, %v1546_v17  ;;  %v1741_v19 = vmul.f32 0.00052083336, %v469_v63 }
 0x18d   :  { %v1669_v46 = vpop.permute.xlu1 %336  ;;  %v1671_v54 = vpop.permute.xlu0 %667  ;;  %v808_v59 = vand.u32 2147483647, %v792_v9  ;;  %v505_v3 = vadd.f32 %v1566_v38, %v473_v30  ;;  %v988_v9 = vld [vmem:[#allocation10 + $0x30] sm:$0xff] }
 0x18e   :  { %v379_v23 = vsub.f32 %v983_v18, %v1669_v46  ;;  %v715_v35 = vsub.f32 %v984_v2, %v1671_v54  ;;  %v1745_v46 = vmul.f32 %v470_v16, %v1546_v17  ;;  %v474_v40 = vmul.f32 %v393_v6, %v1543_v10  ;;  %v989_v2 = vld [vmem:[#allocation10 + $0x38] sm:$0xff] }
 0x18f   :  { %v1748_v54 = vmul.f32 0.00052083336, %v807_v4  ;;  %v475_v34 = vmul.f32 %v394_v26, %v1543_v10  ;;  %v472_v4 = vmul.f32 %v391_v51, %v1543_v10  ;;  %v1757_v30 = vmul.f32 %v808_v59, %v1546_v17 }
 0x190   :  { %v395_v63 = vand.u32 2147483647, %v379_v23  ;;  %v506_v26 = vadd.f32 %v1576_v52, %v474_v40  ;;  %v990_v23 = vld [vmem:[#allocation8 + $0x20] sm:$0xff]  ;;  %v1766_v51 = vmul.f32 %v810_v27, %v1546_v17 }
 0x191   :  { %v1696_v55 = vpop.permute.xlu1 %669  ;;  %v1698_v20 = vpop.permute.xlu0 %671 }
 0x192   :  { %v717_v49 = vsub.f32 %v985_v37, %v1698_v20  ;;  %v731_v20 = vand.u32 2147483647, %v715_v35  ;;  %v716_v16 = vsub.f32 %v987_v62, %v1696_v55  ;;  %v520_v55 = vsel %vm60_vm0, %v505_v3, 0.0 }
 0x193   :  { %v476_v35 = vmul.f32 %v395_v63, %v1543_v10 }
 0x194   :  { %v733_v13 = vand.u32 2147483647, %v717_v49  ;;  %v811_v37 = vmul.f32 %v731_v20, %v1543_v10  ;;  %v732_v49 = vand.u32 2147483647, %v716_v16  ;;  %v992_v20 = vld [vmem:[#allocation10 + $0x40] sm:$0xff]  ;;  %v993_v16 = vld [vmem:[#allocation10 + $0x48] sm:$0xff] }
 0x195   :  { %v674_v50 = vpop.permute.xlu1 %673  ;;  %v1721_v60 = vpop.permute.xlu0 %338 }
 0x196   :  { %v718_v48 = vsub.f32 %v986_v24, %v674_v50  ;;  %v380_v6 = vsub.f32 %v988_v9, %v1721_v60  ;;  %v507_v60 = vadd.f32 %v1578_v53, %v475_v34  ;;  %v813_v24 = vmul.f32 %v733_v13, %v1543_v10 }
 0x197   :  { %v535_v34 = vsel %vm60_vm0, %v506_v26, 0.0 }
 0x198   :  { %v734_v28 = vand.u32 2147483647, %v718_v48  ;;  %v396_v52 = vand.u32 2147483647, %v380_v6  ;;  %v522_v27 = vsel %vm60_vm0, %v507_v60, 0.0  ;;  %v812_v6 = vmul.f32 %v732_v49, %v1543_v10 }
 0x199   :  { %v341_v36 = vpop.permute.xlu1 %340  ;;  %v676_v25 = vpop.permute.xlu0 %675 }
 0x19a   :  { %v381_v38 = vsub.f32 %v989_v2, %v341_v36  ;;  %v719_v43 = vsub.f32 %v990_v23, %v676_v25  ;;  %v519_v36 = vsel %vm60_vm0, %v503_v42, 0.0  ;;  %v504_v25 = vadd.f32 %v1560_v33, %v472_v4  ;;  %v994_v4 = vld [vmem:[#allocation8 + $0x30] sm:$0xff] }
 0x19b   :  { %v521_v3 = vadd.f32 %v520_v55, %v519_v36  ;;  %v814_v17 = vmul.f32 %v734_v28, %v1543_v10  ;;  %v508_v42 = vadd.f32 %v1583_v11, %v476_v35  ;;  %v843_v33 = vadd.f32 %v1589_v58, %v811_v37  ;;  %v995_v37 = vld [vmem:[#allocation10 + $0x50] sm:$0xff] }
 0x19c   :  { %v397_v48 = vand.u32 2147483647, %v381_v38  ;;  %v735_v63 = vand.u32 2147483647, %v719_v43  ;;  %v534_v26 = vsel %vm60_vm0, %v504_v25, 0.0  ;;  %v845_v28 = vadd.f32 %v1610_v5, %v813_v24 }
 0x19d   :  { %v678_v18 = vpop.permute.xlu1 %677  ;;  %v343_v50 = vpop.permute.xlu0 %342  ;;  %v523_v43 = vadd.f32 %v522_v27, %v521_v3  ;;  %v846_v55 = vadd.f32 %v1623_v45, %v814_v17  ;;  %v537_v60 = vsel %vm60_vm0, %v508_v42, 0.0 }
 0x19e   :  { %v720_v53 = vsub.f32 %v991_v14, %v678_v18  ;;  %v382_v62 = vsub.f32 %v992_v20, %v343_v50  ;;  %v477_v18 = vmul.f32 %v396_v52, %v1543_v10  ;;  %v478_v11 = vmul.f32 %v397_v48, %v1543_v10 }
 0x19f   :  { %v536_v50 = vadd.f32 %v535_v34, %v534_v26  ;;  %v815_v58 = vmul.f32 %v735_v63, %v1543_v10  ;;  %v859_v52 = vsel %vm60_vm0, %v843_v33, 0.0  ;;  %v860_v48 = vsel %vm60_vm0, %v845_v28, 0.0  ;;  %v997_v63 = vld [vmem:[#allocation8 + $0x38] sm:$0xff] }
 0x1a0   :  { %v736_v23 = vand.u32 2147483647, %v720_v53  ;;  %v398_v35 = vand.u32 2147483647, %v382_v62  ;;  %v509_v5 = vadd.f32 %v1625_v47, %v477_v18  ;;  %v510_v45 = vadd.f32 %v1630_v56, %v478_v11  ;;  %v996_v53 = vld [vmem:[#allocation10 + $0x58] sm:$0xff] }
 0x1a1   :  { %v345_v59 = vpop.permute.xlu1 %344  ;;  %v680_v40 = vpop.permute.xlu0 %679  ;;  %v875_v34 = vsel %vm60_vm0, %v846_v55, 0.0  ;;  %v847_v17 = vadd.f32 %v1636_v57, %v815_v58  ;;  %v538_v47 = vadd.f32 %v537_v60, %v536_v50  ;;  %v861_v57 = vadd.f32 %v860_v48, %v859_v52 }
 0x1a2   :  { %v383_v9 = vsub.f32 %v993_v16, %v345_v59  ;;  %v721_v13 = vsub.f32 %v994_v4, %v680_v40  ;;  %v844_v59 = vadd.f32 %v1608_v0, %v812_v6  ;;  %v816_v14 = vmul.f32 %v736_v23, %v1543_v10  ;;  %v998_v0 = vld [vmem:[#allocation8 + $0x40] sm:$0xff] }
 0x1a3   :  { %v479_v20 = vmul.f32 %v398_v35, %v1543_v10  ;;  %v862_v26 = vsel %vm60_vm0, %v847_v17, 0.0  ;;  %v999_v23 = vld [vmem:[#allocation10 + $0x60] sm:$0xff] }
 0x1a4   :  { %v399_v36 = vand.u32 2147483647, %v383_v9  ;;  %v737_v40 = vand.u32 2147483647, %v721_v13  ;;  %v874_v56 = vsel %vm60_vm0, %v844_v59, 0.0  ;;  %v524_v9 = vsel %vm60_vm0, %v509_v5, 0.0 }
 0x1a5   :  { %v682_v2 = vpop.permute.xlu1 %681  ;;  %v347_v38 = vpop.permute.xlu0 %346  ;;  %v876_v13 = vadd.f32 %v875_v34, %v874_v56  ;;  %v525_v55 = vadd.f32 %v524_v9, %v523_v43  ;;  %v511_v58 = vadd.f32 %v1657_v31, %v479_v20  ;;  %v1001_v43 = vld [vmem:[#allocation10 + $0x68] sm:$0xff]  ;;  %v1003_v56 = vld [vmem:[#allocation8 + $0x58] sm:$0xff] }
 0x1a6   :  { %v384_v49 = vsub.f32 %v995_v37, %v347_v38  ;;  %v722_v27 = vsub.f32 %v997_v63, %v682_v2  ;;  %v480_v62 = vmul.f32 %v399_v36, %v1543_v10  ;;  %v817_v33 = vmul.f32 %v737_v40, %v1543_v10 }
 0x1a7   :  { %v539_v2 = vsel %vm60_vm0, %v510_v45, 0.0  ;;  %v848_v38 = vadd.f32 %v1652_v22, %v816_v14 }
 0x1a8   :  { %v400_v16 = vand.u32 2147483647, %v384_v49  ;;  %v738_v28 = vand.u32 2147483647, %v722_v27  ;;  %v512_v60 = vadd.f32 %v1663_v61, %v480_v62  ;;  %v849_v36 = vadd.f32 %v1673_v7, %v817_v33  ;;  %v1000_v49 = vld [vmem:[#allocation8 + $0x48] sm:$0xff]  ;;  %v1002_v7 = vld [vmem:[#allocation8 + $0x50] sm:$0xff] }
 0x1a9   :  { %v349_v25 = vpop.permute.xlu1 %348  ;;  %v684_v24 = vpop.permute.xlu0 %683  ;;  %v540_v40 = vadd.f32 %v539_v2, %v538_v47  ;;  %v1004_v33 = vld [vmem:[#allocation10 + $0x70] sm:$0xff] }
 0x1aa   :  { %v385_v3 = vsub.f32 %v996_v53, %v349_v25  ;;  %v723_v42 = vsub.f32 %v998_v0, %v684_v24  ;;  %v481_v35 = vmul.f32 %v400_v16, %v1543_v10  ;;  %v863_v25 = vadd.f32 %v862_v26, %v861_v57 }
 0x1ab   :  { %v877_v24 = vsel %vm60_vm0, %v848_v38, 0.0  ;;  %v818_v31 = vmul.f32 %v738_v28, %v1543_v10  ;;  %v526_v53 = vsel %vm60_vm0, %v511_v58, 0.0  ;;  %v864_v63 = vsel %vm60_vm0, %v849_v36, 0.0 }
 0x1ac   :  { %v401_v6 = vand.u32 2147483647, %v385_v3  ;;  %v739_v11 = vand.u32 2147483647, %v723_v42  ;;  %v541_v3 = vsel %vm60_vm0, %v512_v60, 0.0  ;;  %v513_v34 = vadd.f32 %v1683_v32, %v481_v35 }
 0x1ad   :  { %v686_v18 = vpop.permute.xlu1 %685  ;;  %v351_v4 = vpop.permute.xlu0 %350  ;;  %v850_v32 = vadd.f32 %v1676_v12, %v818_v31  ;;  %v542_v2 = vadd.f32 %v541_v3, %v540_v40  ;;  %v865_v28 = vadd.f32 %v864_v63, %v863_v25  ;;  %v1008_v63 = vld [vmem:[#allocation8 + $0x70] sm:$0xff] }
 0x1ae   :  { %v386_v50 = vsub.f32 %v999_v23, %v351_v4  ;;  %v482_v37 = vmul.f32 %v401_v6, %v1543_v10  ;;  %v724_v52 = vsub.f32 %v1000_v49, %v686_v18  ;;  %v819_v61 = vmul.f32 %v739_v11, %v1543_v10  ;;  %v1006_v49 = vld [vmem:[#allocation8 + $0x60] sm:$0xff] }
 0x1af   :  { %v878_v18 = vadd.f32 %v877_v24, %v876_v13  ;;  %v527_v4 = vadd.f32 %v526_v53, %v525_v55  ;;  %v1005_v55 = vld [vmem:[#allocation10 + $0x78] sm:$0xff]  ;;  %v879_v35 = vsel %vm60_vm0, %v850_v32, 0.0  ;;  %v1007_v53 = vld [vmem:[#allocation8 + $0x68] sm:$0xff] }
 0x1b0   :  { %v402_v22 = vand.u32 2147483647, %v386_v50  ;;  %v514_v27 = vadd.f32 %v1701_v15, %v482_v37  ;;  %v740_v0 = vand.u32 2147483647, %v724_v52  ;;  %v851_v57 = vadd.f32 %v1705_v44, %v819_v61  ;;  %v1009_v32 = vld [vmem:[#allocation8 + $0x78] sm:$0xff] }
 0x1b1   :  { %v353_v59 = vpop.permute.xlu1 %352  ;;  %v688_v5 = vpop.permute.xlu0 %687  ;;  %v528_v15 = vsel %vm60_vm0, %v513_v34, 0.0 }
 0x1b2   :  { %v387_v48 = vsub.f32 %v1001_v43, %v353_v59  ;;  %v483_v45 = vmul.f32 %v402_v22, %v1543_v10  ;;  %v725_v14 = vsub.f32 %v1002_v7, %v688_v5  ;;  %v820_v13 = vmul.f32 %v740_v0, %v1543_v10 }
 0x1b3   :  { %v529_v36 = vadd.f32 %v528_v15, %v527_v4  ;;  %v866_v37 = vsel %vm60_vm0, %v851_v57, 0.0 }
 0x1b4   :  { %v403_v17 = vand.u32 2147483647, %v387_v48  ;;  %v741_v42 = vand.u32 2147483647, %v725_v14  ;;  %v515_v62 = vadd.f32 %v1717_v41, %v483_v45  ;;  %v543_v41 = vsel %vm60_vm0, %v514_v27, 0.0  ;;  %v211_v45 = vld [vmem:[#allocation3] sm:$0xff] }
 0x1b5   :  { %v690_v47 = vpop.permute.xlu1 %689  ;;  %v355_v20 = vpop.permute.xlu0 %354  ;;  %v852_v61 = vadd.f32 %v1708_v29, %v820_v13  ;;  %v867_v34 = vadd.f32 %v866_v37, %v865_v28 }
 0x1b6   :  { %v484_v16 = vmul.f32 %v403_v17, %v1543_v10  ;;  %v726_v9 = vsub.f32 %v1003_v56, %v690_v47  ;;  %v388_v6 = vsub.f32 %v1004_v33, %v355_v20  ;;  %v821_v23 = vmul.f32 %v741_v42, %v1543_v10  ;;  %v212_v33 = vld [vmem:[#allocation3 + $0x8] sm:$0xff] }
 0x1b7   :  { %v530_v12 = vsel %vm60_vm0, %v515_v62, 0.0 }
 0x1b8   :  { %v742_v38 = vand.u32 2147483647, %v726_v9  ;;  %v404_v26 = vand.u32 2147483647, %v388_v6  ;;  %v516_v11 = vadd.f32 %v1727_v39, %v484_v16  ;;  %v544_v39 = vadd.f32 %v543_v41, %v542_v2 }
 0x1b9   :  { %v357_v50 = vpop.permute.xlu1 %356  ;;  %v692_v58 = vpop.permute.xlu0 %691  ;;  %v531_v40 = vadd.f32 %v530_v12, %v529_v36  ;;  %v853_v24 = vadd.f32 %v1730_v21, %v821_v23  ;;  %v881_v9 = vsel %vm60_vm0, %v852_v61, 0.0  ;;  %v553_v12 = vld [vmem:[#allocation4] sm:$0xff]  ;;  %v554_v36 = vld [vmem:[#allocation4 + $0x8] sm:$0xff] }
 0x1ba   :  { %v485_v44 = vmul.f32 %v404_v26, %v1543_v10  ;;  %v389_v60 = vsub.f32 %v1005_v55, %v357_v50  ;;  %v727_v52 = vsub.f32 %v1006_v49, %v692_v58  ;;  %v822_v22 = vmul.f32 %v742_v38, %v1543_v10 }
 0x1bb   :  { %v545_v25 = vsel %vm60_vm0, %v516_v11, 0.0  ;;  %v868_v29 = vsel %vm60_vm0, %v853_v24, 0.0 }
 0x1bc   :  { %v517_v59 = vadd.f32 %v1741_v19, %v485_v44  ;;  %v405_v5 = vand.u32 2147483647, %v389_v60  ;;  %v743_v43 = vand.u32 2147483647, %v727_v52  ;;  %v546_v0 = vadd.f32 %v545_v25, %v544_v39 }
 0x1bd   :  { %v694_v48 = vpop.permute.xlu1 %693  ;;  %v696_v31 = vpop.permute.xlu0 %695  ;;  %v854_v21 = vadd.f32 %v1739_v1, %v822_v22  ;;  %v880_v1 = vadd.f32 %v879_v35, %v878_v18 }
 0x1be   :  { %v532_v7 = vsel %vm60_vm0, %v517_v59, 0.0  ;;  %v486_v14 = vmul.f32 %v405_v5, %v1543_v10  ;;  %v728_v3 = vsub.f32 %v1007_v53, %v694_v48  ;;  %v823_v17 = vmul.f32 %v743_v43, %v1543_v10 }
 0x1bf   :  { %v533_v19 = vadd.f32 %v532_v7, %v531_v40  ;;  %v729_v27 = vsub.f32 %v1008_v63, %v696_v31  ;;  %v883_v38 = vsel %vm60_vm0, %v854_v21, 0.0  ;;  %v882_v41 = vadd.f32 %v881_v9, %v880_v1 }
 0x1c0   :  { %v518_v42 = vadd.f32 %v1745_v46, %v486_v14  ;;  %v744_v47 = vand.u32 2147483647, %v728_v3  ;;  %v855_v62 = vadd.f32 %v1748_v54, %v823_v17  ;;  %v869_v54 = vadd.f32 %v868_v29, %v867_v34 }
 0x1c1   :  { %v549_v20 = vadd.f32 %v533_v19, %v211_v45  ;;  %v745_v16 = vand.u32 2147483647, %v729_v27  ;;  %v698_v56 = vpop.permute.xlu1 %697  ;;  %v884_v13 = vadd.f32 %v883_v38, %v882_v41 }
 0x1c2   :  { %v547_v6 = vsel %vm60_vm0, %v518_v42, 0.0  ;;  %v824_v4 = vmul.f32 %v744_v47, %v1543_v10  ;;  %v730_v57 = vsub.f32 %v1009_v32, %v698_v56  ;;  %v870_v2 = vsel %vm60_vm0, %v855_v62, 0.0 }
 0x1c3   :  { %551 = vst.msk [vmem:[#allocation3] sm:$0xff] %vm60_vm0, %v549_v20  ;;  %v548_v46 = vadd.f32 %v547_v6, %v546_v0  ;;  %v825_v15 = vmul.f32 %v745_v16, %v1543_v10  ;;  %v871_v50 = vadd.f32 %v870_v2, %v869_v54 }
 0x1c4   :  { %v856_v26 = vadd.f32 %v1757_v30, %v824_v4  ;;  %v746_v28 = vand.u32 2147483647, %v730_v57 }
 0x1c5   :  { %v550_v11 = vadd.f32 %v548_v46, %v212_v33  ;;  %v857_v23 = vadd.f32 %v1760_v8, %v825_v15 }
 0x1c6   :  { %v885_v18 = vsel %vm60_vm0, %v856_v26, 0.0  ;;  %v826_v58 = vmul.f32 %v746_v28, %v1543_v10 }
 0x1c7   :  { %552 = vst.msk [vmem:[#allocation3 + $0x8] sm:$0xff] %vm60_vm0, %v550_v11  ;;  %v872_v44 = vsel %vm60_vm0, %v857_v23, 0.0  ;;  %v886_v30 = vadd.f32 %v885_v18, %v884_v13 }
 0x1c8   :  { %v873_v55 = vadd.f32 %v872_v44, %v871_v50  ;;  %v858_v60 = vadd.f32 %v1766_v51, %v826_v58 }
 0x1ca   :  { %v889_v35 = vadd.f32 %v873_v55, %v553_v12  ;;  %v887_v37 = vsel %vm60_vm0, %v858_v60, 0.0  ;;  %v911_v49 = vld [vmem:[#allocation3] sm:$0xff] }
 0x1cb   :  { %v888_v8 = vadd.f32 %v887_v37, %v886_v30  ;;  %v913_v39 = vsel %vm60_vm0, %v911_v49, 0.0 }
 0x1cc   :  { %891 = vst.msk [vmem:[#allocation4] sm:$0xff] %vm60_vm0, %v889_v35 }
 0x1cd   :  { %v890_v52 = vadd.f32 %v888_v8, %v554_v36 }
 0x1ce   :  { %v912_v10 = vld [vmem:[#allocation3 + $0x8] sm:$0xff] }
 0x1cf   :  { %892 = vst.msk [vmem:[#allocation4 + $0x8] sm:$0xff] %vm60_vm0, %v890_v52  ;;  %v914_v22 = vsel %vm60_vm0, %v912_v10, 0.0 }
 0x1d0   :  { %v915_v59 = vadd.f32 %v914_v22, %v913_v39 }
 0x1d2   :  { %916 = vadd.xlane.f32.xlu1 %v915_v59 }
 0x1d3   :  { %v925_v51 = vld [vmem:[#allocation4] sm:$0xff] }
 0x1d4   :  { %v927_v40 = vsel %vm60_vm0, %v925_v51, 0.0 }
 0x1d6   :  { %v926_v5 = vld [vmem:[#allocation4 + $0x8] sm:$0xff] }
 0x1d7   :  { %v928_v25 = vsel %vm60_vm0, %v926_v5, 0.0 }
 0x1d8   :  { %v929_v24 = vadd.f32 %v928_v25, %v927_v40 }
 0x1da   :  { %930 = vadd.xlane.f32.xlu0 %v929_v24 }
 0x1f3   :  { %v902_v43 = vpop.xlane.xlu0 %901 }
 0x1f4   :  { %v903_v48 = vrot.slane %v902_v43, 4 }
 0x1f6   :  { %v904_v31 = vadd.f32 %v903_v48, %v902_v43 }
 0x1f8   :  { %v905_v61 = vrot.slane %v904_v31, 2 }
 0x1fa   :  { %v906_v45 = vadd.f32 %v905_v61, %v904_v31 }
 0x1fc   :  { %v907_v7 = vrot.slane %v906_v45, 1 }
 0x1fe   :  { %v908_v14 = vadd.f32 %v907_v7, %v906_v45 }
 0x200   :  { %966 = vpush %v908_v14 }
 0x231   :  { %s967_s28 = spop %966 }
 0x232   :  { %s910_s29 = smul.f32 0.00048828125, %s967_s28 }
 0x234   :  { %946 = sst [smem:[#allocation11 + $0x1]] %s910_s29 }
 0x25b   :  { %v917_v53 = vpop.xlane.xlu1 %916 }
 0x25c   :  { %v918_v3 = vrot.slane %v917_v53, 4 }
 0x25e   :  { %v919_v34 = vadd.f32 %v918_v3, %v917_v53 }
 0x260   :  { %v920_v19 = vrot.slane %v919_v34, 2 }
 0x262   :  { %v921_v17 = vadd.f32 %v920_v19, %v919_v34 }
 0x263   :  { %v931_v63 = vpop.xlane.xlu0 %930 }
 0x264   :  { %v932_v27 = vrot.slane %v931_v63, 4  ;;  %v922_v0 = vrot.slane %v921_v17, 1 }
 0x266   :  { %v933_v21 = vadd.f32 %v932_v27, %v931_v63  ;;  %v923_v42 = vadd.f32 %v922_v0, %v921_v17 }
 0x268   :  { %v934_v47 = vrot.slane %v933_v21, 2  ;;  %968 = vpush %v923_v42 }
 0x26a   :  { %v935_v29 = vadd.f32 %v934_v47, %v933_v21 }
 0x26c   :  { %v936_v20 = vrot.slane %v935_v29, 1 }
 0x26e   :  { %v937_v62 = vadd.f32 %v936_v20, %v935_v29 }
 0x270   :  { %970 = vpush %v937_v62 }
 0x299   :  { %s969_s30 = spop %968 }
 0x29a   :  { %948 = sst [smem:[#allocation11 + $0x2]] %s969_s30  ;;  %s939_s4 = smul.f32 0.1, %s969_s30 }
 0x29c   :  { %s940_s5 = sadd.f32 %s939_s4, %s910_s29 }
 0x2a1   :  { %s971_s6 = spop %970 }
 0x2a2   :  { %s941_s7 = smul.f32 0.1, %s971_s6  ;;  %950 = sst [smem:[#allocation11 + $0x3]] %s971_s6 }
 0x2a4   :  { %s942_s8 = sadd.f32 %s941_s7, %s940_s5 }
 0x2a6   :  { %944 = sst [smem:[#allocation11]] %s942_s8 }
 0x2a7   :  { %958 = dma.smem_to_hbm %s1092_s9, 16, %s1867_s3, [#allocation7]  }
 0x2a8   :  { %1082 = dma.done.wait [#allocation7], 16  }
 0x2a9   :  { %1083 = vsyncadd [#allocation7], 4294967280 }
 0x2aa   :  { %962 = sfence }
 0x2ab   :  { %963 = vsyncpa [#allocation6], 1 }
 0x2ac   :  { %964 = vsyncpa [#allocation9], 1 }
 0x2ad   :  { %965 = vsyncpa [#allocation7], 1 }

</bundles_post_ra>
